<compile_context>
chip_gen: v7x
topology: tpu7x:2x2x1
jax: 0.10.0
libtpu: 0.0.40
codegen_flags: <defaults>
</compile_context>

<pallas_src>
import functools

import jax
import jax.numpy as jnp
from jax.experimental import pallas as pl
from jax.experimental.pallas import tpu as pltpu

BN_EPS = 1e-5
FEAT = 1024


# ----------------------------------------------------------------------------
# Pallas kernel: TransLayer forward, one (batch, N-chunk) grid step.
# ----------------------------------------------------------------------------
def trans_layer_kernel(x_ref,
                       w0_ref, b0_ref, w1_ref, b1_ref, w2_ref, b2_ref,
                       w3_ref, b3_ref, w4_ref, b4_ref, w5_ref, b5_ref,
                       out_ref, acc_ref):
    c = pl.program_id(1)
    last = pl.num_programs(1) - 1

    @pl.when(c == 0)
    def _():
        acc_ref[...] = jnp.full_like(acc_ref, -jnp.inf)

    pts = x_ref[0]                                    # (TN, 3) f32

    # conv1 (3->64) + BN + ReLU: K=3 contraction done on the VPU (broadcast
    # FMAs) -- an MXU matmul with K=3 would leave the systolic array ~4% busy.
    w0 = w0_ref[...]                                  # (3, 64) f32
    h = (pts[:, 0:1] * w0[0:1, :]
         + pts[:, 1:2] * w0[1:2, :]
         + pts[:, 2:3] * w0[2:3, :]) + b0_ref[...]
    h = jnp.maximum(h, 0.0)                           # (TN, 64) f32

    # conv2 (64->128) + BN + ReLU: bf16 MXU, f32 accumulate, f32 epilogue.
    h = jnp.dot(h.astype(jnp.bfloat16), w1_ref[...],
                preferred_element_type=jnp.float32) + b1_ref[...]
    h = jnp.maximum(h, 0.0)                           # (TN, 128)

    # conv3 (128->1024) + BN + ReLU
    h = jnp.dot(h.astype(jnp.bfloat16), w2_ref[...],
                preferred_element_type=jnp.float32) + b2_ref[...]
    h = jnp.maximum(h, 0.0)                           # (TN, 1024)

    # MaxPool1d(num_points): running max over N-chunks.
    acc_ref[...] = jnp.maximum(acc_ref[...],
                               jnp.max(h, axis=0, keepdims=True))

    @pl.when(c == last)
    def _():
        g = acc_ref[...]                              # (1, 1024) f32
        # fc1 (1024->512) + BN + ReLU
        g = jnp.dot(g.astype(jnp.bfloat16), w3_ref[...],
                    preferred_element_type=jnp.float32) + b3_ref[...]
        g = jnp.maximum(g, 0.0)
        # fc2 (512->256) + BN + ReLU
        g = jnp.dot(g.astype(jnp.bfloat16), w4_ref[...],
                    preferred_element_type=jnp.float32) + b4_ref[...]
        g = jnp.maximum(g, 0.0)
        # fc3 (256->9); identity matrix already folded into b5
        t9 = jnp.dot(g.astype(jnp.bfloat16), w5_ref[...],
                     preferred_element_type=jnp.float32) + b5_ref[...]
        out_ref[0] = t9                               # (1, 9)


# ----------------------------------------------------------------------------
# Parameter construction (deterministic, synthetic) with BN folding.
# Weights bf16 (except the tiny conv1 used on the VPU), biases f32.
# ----------------------------------------------------------------------------
def _make_layer(key, cin, cout, bn, w_dtype):
    k1, k2, k3, k4, k5, k6 = jax.random.split(key, 6)
    w = jax.random.normal(k1, (cin, cout), jnp.float32) * 0.1
    bias = jax.random.normal(k2, (cout,), jnp.float32) * 0.05
    if bn:
        gamma = 1.0 + 0.1 * jax.random.normal(k3, (cout,), jnp.float32)
        beta = 0.05 * jax.random.normal(k4, (cout,), jnp.float32)
        mean = 0.05 * jax.random.normal(k5, (cout,), jnp.float32)
        var = 1.0 + 0.1 * jnp.abs(jax.random.normal(k6, (cout,), jnp.float32))
        scale = gamma / jnp.sqrt(var + BN_EPS)
        w = w * scale[None, :]
        bias = (bias - mean) * scale + beta
    return w.astype(w_dtype), bias.reshape(1, cout).astype(jnp.float32)


def make_params(key):
    dims = [
        (3, 64, True, jnp.float32),        # conv1 + bn   (VPU path, keep f32)
        (64, 128, True, jnp.bfloat16),     # conv2 + bn
        (128, 1024, True, jnp.bfloat16),   # conv3 + bn
        (1024, 512, True, jnp.bfloat16),   # fc1   + bn
        (512, 256, True, jnp.bfloat16),    # fc2   + bn
        (256, 9, False, jnp.bfloat16),     # fc3   (identity folded below)
    ]
    keys = jax.random.split(key, len(dims))
    params = [_make_layer(kk, cin, cout, bn, dt)
              for kk, (cin, cout, bn, dt) in zip(keys, dims)]
    iden = jnp.array([1, 0, 0, 0, 1, 0, 0, 0, 1], jnp.float32).reshape(1, 9)
    w5, b5 = params[5]
    params[5] = (w5, b5 + iden)
    return params


# ----------------------------------------------------------------------------
# Wrapper: tiling over N, grid over (batch, N-chunk).
# ----------------------------------------------------------------------------
def _round_up(x, m):
    return ((x + m - 1) // m) * m


@jax.jit
def trans_layer_forward(x, flat_params):
    # x: (B, 3, N)  -- PyTorch NCL layout
    B, C, N = x.shape
    assert C == 3
    x_nc = jnp.transpose(x, (0, 2, 1))                # (B, N, 3)

    # N tile: big enough to keep the MXU/DMA busy, small enough for VMEM.
    TN = 512 if N >= 512 else _round_up(N, 8)
    Np = _round_up(N, TN)
    if Np != N:
        # Pad by replicating the last point: the max-pool result is unchanged.
        pad = jnp.broadcast_to(x_nc[:, N - 1:N, :], (B, Np - N, 3))
        x_nc = jnp.concatenate([x_nc, pad], axis=1)
    num_chunks = Np // TN

    in_specs = [pl.BlockSpec((1, TN, 3), lambda b, c: (b, c, 0))]
    for arr in flat_params:
        in_specs.append(
            pl.BlockSpec(arr.shape, lambda b, c, nd=arr.ndim: (0,) * nd))

    out_specs = pl.BlockSpec((1, 1, 9), lambda b, c: (b, 0, 0))
    out_shape = jax.ShapeDtypeStruct((B, 1, 9), jnp.float32)

    flops = (2 * B * Np * (3 * 64 + 64 * 128 + 128 * 1024)
             + 2 * B * (1024 * 512 + 512 * 256 + 256 * 9))
    bytes_accessed = (x_nc.size * 4
                      + sum(int(a.size) * a.dtype.itemsize for a in flat_params)
                      + B * 9 * 4)
    cost = pl.CostEstimate(flops=flops, transcendentals=0,
                           bytes_accessed=bytes_accessed)

    t9 = pl.pallas_call(
        trans_layer_kernel,
        grid=(B, num_chunks),
        in_specs=in_specs,
        out_specs=out_specs,
        out_shape=out_shape,
        scratch_shapes=[pltpu.VMEM((1, FEAT), jnp.float32)],
        compiler_params=pltpu.CompilerParams(
            dimension_semantics=("parallel", "arbitrary"),
            vmem_limit_bytes=48 * 1024 * 1024,
        ),
        cost_estimate=cost,
    )(x_nc, *flat_params)

    return t9.reshape(B, 3, 3)


# ----------------------------------------------------------------------------
# Pure-JAX reference (same folded params, same bf16 matmul inputs).
# ----------------------------------------------------------------------------
def trans_layer_reference(x, params):
    (w0, b0), (w1, b1), (w2, b2), (w3, b3), (w4, b4), (w5, b5) = params

    def mm(a, w, b, relu=True):
        y = jnp.dot(a.astype(w.dtype), w,
                    preferred_element_type=jnp.float32) + b
        return jnp.maximum(y, 0.0) if relu else y

    pts = jnp.transpose(x, (0, 2, 1)).astype(jnp.float32)   # (B, N, 3)
    h = mm(pts, w0, b0)
    h = mm(h, w1, b1)
    h = mm(h, w2, b2)
    g = jnp.max(h, axis=1)                                   # (B, 1024)
    g = mm(g, w3, b3)
    g = mm(g, w4, b4)
    t9 = mm(g, w5, b5, relu=False)
    return t9.reshape(-1, 3, 3)


if __name__ == "__main__":
    B, N = 2, 16            # small shapes: batch=2, num_points=16

    key = jax.random.PRNGKey(0)
    kx, kp = jax.random.split(key)
    x = jax.random.normal(kx, (B, 3, N), jnp.float32)   # PyTorch layout (B, 3, N)

    params = make_params(kp)
    flat_params = tuple(a for wb in params for a in wb)

    trans = trans_layer_forward(x, flat_params)
    jax.block_until_ready(trans)

    assert trans.shape == (B, 3, 3)
    assert bool(jnp.all(jnp.isfinite(trans)))

    ref = trans_layer_reference(x, params)
    assert bool(jnp.allclose(trans, ref, atol=2e-2, rtol=2e-2))

    print("KERNEL_OK")
</pallas_src>

<mosaic_0001>
module attributes {stable_mosaic.version = 11 : i64} {
  func.func @trans_layer_kernel(%arg0: i32, %arg1: i32, %arg2: memref<1x16x3xf32, #tpu.memory_space<vmem>>, %arg3: memref<3x64xf32, #tpu.memory_space<vmem>>, %arg4: memref<1x64xf32, #tpu.memory_space<vmem>>, %arg5: memref<64x128xbf16, #tpu.memory_space<vmem>>, %arg6: memref<1x128xf32, #tpu.memory_space<vmem>>, %arg7: memref<128x1024xbf16, #tpu.memory_space<vmem>>, %arg8: memref<1x1024xf32, #tpu.memory_space<vmem>>, %arg9: memref<1024x512xbf16, #tpu.memory_space<vmem>>, %arg10: memref<1x512xf32, #tpu.memory_space<vmem>>, %arg11: memref<512x256xbf16, #tpu.memory_space<vmem>>, %arg12: memref<1x256xf32, #tpu.memory_space<vmem>>, %arg13: memref<256x9xbf16, #tpu.memory_space<vmem>>, %arg14: memref<1x9xf32, #tpu.memory_space<vmem>>, %arg15: memref<1x1x9xf32, #tpu.memory_space<vmem>>, %arg16: memref<1x1024xf32, #tpu.memory_space<vmem>>) attributes {dimension_semantics = [#tpu.dimension_semantics<parallel>, #tpu.dimension_semantics<arbitrary>], iteration_bounds = array<i64: 2, 1>, scalar_prefetch = 0 : i64, scratch_operands = 1 : i64, tpu.core_type = #tpu.core_type<tc>, window_params = [{transform_indices = @transform_0, window_bounds = array<i64: 1, 16, 3>}, {pipeline_mode = #tpu.pipeline_mode<synchronous>, transform_indices = @transform_1, window_bounds = array<i64: 3, 64>}, {pipeline_mode = #tpu.pipeline_mode<synchronous>, transform_indices = @transform_2, window_bounds = array<i64: 1, 64>}, {pipeline_mode = #tpu.pipeline_mode<synchronous>, transform_indices = @transform_3, window_bounds = array<i64: 64, 128>}, {pipeline_mode = #tpu.pipeline_mode<synchronous>, transform_indices = @transform_4, window_bounds = array<i64: 1, 128>}, {pipeline_mode = #tpu.pipeline_mode<synchronous>, transform_indices = @transform_5, window_bounds = array<i64: 128, 1024>}, {pipeline_mode = #tpu.pipeline_mode<synchronous>, transform_indices = @transform_6, window_bounds = array<i64: 1, 1024>}, {pipeline_mode = #tpu.pipeline_mode<synchronous>, transform_indices = @transform_7, window_bounds = array<i64: 1024, 512>}, {pipeline_mode = #tpu.pipeline_mode<synchronous>, transform_indices = @transform_8, window_bounds = array<i64: 1, 512>}, {pipeline_mode = #tpu.pipeline_mode<synchronous>, transform_indices = @transform_9, window_bounds = array<i64: 512, 256>}, {pipeline_mode = #tpu.pipeline_mode<synchronous>, transform_indices = @transform_10, window_bounds = array<i64: 1, 256>}, {pipeline_mode = #tpu.pipeline_mode<synchronous>, transform_indices = @transform_11, window_bounds = array<i64: 256, 9>}, {pipeline_mode = #tpu.pipeline_mode<synchronous>, transform_indices = @transform_12, window_bounds = array<i64: 1, 9>}, {transform_indices = @transform_13, window_bounds = array<i64: 1, 1, 9>}]} {
    %c0_i32 = arith.constant 0 : i32
    %0 = arith.cmpi eq, %arg1, %c0_i32 : i32
    %1 = arith.extui %0 : i1 to i32
    %c0_i32_0 = arith.constant 0 : i32
    %2 = arith.cmpi ne, %1, %c0_i32_0 : i32
    scf.if %2 {
      %cst_26 = arith.constant 0xFF800000 : f32
      %52 = vector.broadcast %cst_26 : f32 to vector<1x1024xf32>
      %c0_27 = arith.constant 0 : index
      %c0_28 = arith.constant 0 : index
      %53 = vector.load %arg16[%c0_27, %c0_28] : memref<1x1024xf32, #tpu.memory_space<vmem>>, vector<1x1024xf32>
      tpu.vector_store %arg16[%c0_27, %c0_28], %52 {strides = array<i32>} : memref<1x1024xf32, #tpu.memory_space<vmem>>, vector<1x1024xf32>,
    } else {
    }
    %c0 = arith.constant 0 : index
    %c0_1 = arith.constant 0 : index
    %c0_2 = arith.constant 0 : index
    %3 = vector.load %arg2[%c0, %c0_1, %c0_2] : memref<1x16x3xf32, #tpu.memory_space<vmem>>, vector<1x16x3xf32>
    %4 = vector.shape_cast %3 : vector<1x16x3xf32> to vector<16x3xf32>
    %c0_3 = arith.constant 0 : index
    %c0_4 = arith.constant 0 : index
    %5 = vector.load %arg3[%c0_3, %c0_4] : memref<3x64xf32, #tpu.memory_space<vmem>>, vector<3x64xf32>
    %6 = vector.extract_strided_slice %4 {offsets = [0, 0], sizes = [16, 1], strides = [1, 1]} : vector<16x3xf32> to vector<16x1xf32>
    %7 = vector.extract_strided_slice %5 {offsets = [0, 0], sizes = [1, 64], strides = [1, 1]} : vector<3x64xf32> to vector<1x64xf32>
    %8 = vector.broadcast %6 : vector<16x1xf32> to vector<16x64xf32>
    %9 = vector.broadcast %7 : vector<1x64xf32> to vector<16x64xf32>
    %10 = arith.mulf %8, %9 : vector<16x64xf32>
    %11 = vector.extract_strided_slice %4 {offsets = [0, 1], sizes = [16, 1], strides = [1, 1]} : vector<16x3xf32> to vector<16x1xf32>
    %12 = vector.extract_strided_slice %5 {offsets = [1, 0], sizes = [1, 64], strides = [1, 1]} : vector<3x64xf32> to vector<1x64xf32>
    %13 = vector.broadcast %11 : vector<16x1xf32> to vector<16x64xf32>
    %14 = vector.broadcast %12 : vector<1x64xf32> to vector<16x64xf32>
    %15 = arith.mulf %13, %14 : vector<16x64xf32>
    %16 = arith.addf %10, %15 : vector<16x64xf32>
    %17 = vector.extract_strided_slice %4 {offsets = [0, 2], sizes = [16, 1], strides = [1, 1]} : vector<16x3xf32> to vector<16x1xf32>
    %18 = vector.extract_strided_slice %5 {offsets = [2, 0], sizes = [1, 64], strides = [1, 1]} : vector<3x64xf32> to vector<1x64xf32>
    %19 = vector.broadcast %17 : vector<16x1xf32> to vector<16x64xf32>
    %20 = vector.broadcast %18 : vector<1x64xf32> to vector<16x64xf32>
    %21 = arith.mulf %19, %20 : vector<16x64xf32>
    %22 = arith.addf %16, %21 : vector<16x64xf32>
    %c0_5 = arith.constant 0 : index
    %c0_6 = arith.constant 0 : index
    %23 = vector.load %arg4[%c0_5, %c0_6] : memref<1x64xf32, #tpu.memory_space<vmem>>, vector<1x64xf32>
    %24 = vector.broadcast %23 : vector<1x64xf32> to vector<16x64xf32>
    %25 = arith.addf %22, %24 : vector<16x64xf32>
    %cst = arith.constant 0.000000e+00 : f32
    %26 = vector.broadcast %cst : f32 to vector<16x64xf32>
    %27 = arith.maximumf %25, %26 : vector<16x64xf32>
    %28 = arith.truncf %27 : vector<16x64xf32> to vector<16x64xbf16>
    %c0_7 = arith.constant 0 : index
    %c0_8 = arith.constant 0 : index
    %29 = vector.load %arg5[%c0_7, %c0_8] : memref<64x128xbf16, #tpu.memory_space<vmem>>, vector<64x128xbf16>
    %cst_9 = arith.constant dense<0.000000e+00> : vector<16x128xf32>
    %30 = tpu.matmul %28, %29, %cst_9 {dimension_numbers = #tpu.dot_dimension_numbers<[1], [0], [0], [1], [0, 0, 1, 1], [], []>} : vector<16x64xbf16>, vector<64x128xbf16>, vector<16x128xf32> -> vector<16x128xf32>
    %c0_10 = arith.constant 0 : index
    %c0_11 = arith.constant 0 : index
    %31 = vector.load %arg6[%c0_10, %c0_11] : memref<1x128xf32, #tpu.memory_space<vmem>>, vector<1x128xf32>
    %32 = vector.broadcast %31 : vector<1x128xf32> to vector<16x128xf32>
    %33 = arith.addf %30, %32 : vector<16x128xf32>
    %cst_12 = arith.constant 0.000000e+00 : f32
    %34 = vector.broadcast %cst_12 : f32 to vector<16x128xf32>
    %35 = arith.maximumf %33, %34 : vector<16x128xf32>
    %36 = arith.truncf %35 : vector<16x128xf32> to vector<16x128xbf16>
    %c0_13 = arith.constant 0 : index
    %c0_14 = arith.constant 0 : index
    %37 = vector.load %arg7[%c0_13, %c0_14] : memref<128x1024xbf16, #tpu.memory_space<vmem>>, vector<128x1024xbf16>
    %cst_15 = arith.constant dense<0.000000e+00> : vector<16x1024xf32>
    %38 = tpu.matmul %36, %37, %cst_15 {dimension_numbers = #tpu.dot_dimension_numbers<[1], [0], [0], [1], [0, 0, 1, 1], [], []>} : vector<16x128xbf16>, vector<128x1024xbf16>, vector<16x1024xf32> -> vector<16x1024xf32>
    %c0_16 = arith.constant 0 : index
    %c0_17 = arith.constant 0 : index
    %39 = vector.load %arg8[%c0_16, %c0_17] : memref<1x1024xf32, #tpu.memory_space<vmem>>, vector<1x1024xf32>
    %40 = vector.broadcast %39 : vector<1x1024xf32> to vector<16x1024xf32>
    %41 = arith.addf %38, %40 : vector<16x1024xf32>
    %cst_18 = arith.constant 0.000000e+00 : f32
    %42 = vector.broadcast %cst_18 : f32 to vector<16x1024xf32>
    %43 = arith.maximumf %41, %42 : vector<16x1024xf32>
    %c0_19 = arith.constant 0 : index
    %c0_20 = arith.constant 0 : index
    %44 = vector.load %arg16[%c0_19, %c0_20] : memref<1x1024xf32, #tpu.memory_space<vmem>>, vector<1x1024xf32>
    %cst_21 = arith.constant dense<0xFF800000> : vector<1024xf32>
    %45 = vector.multi_reduction <maximumf>, %43, %cst_21 [0] : vector<16x1024xf32> to vector<1024xf32>
    %46 = vector.shape_cast %45 : vector<1024xf32> to vector<1x1024xf32>
    %47 = arith.maximumf %44, %46 : vector<1x1024xf32>
    %c0_22 = arith.constant 0 : index
    %c0_23 = arith.constant 0 : index
    %48 = vector.load %arg16[%c0_22, %c0_23] : memref<1x1024xf32, #tpu.memory_space<vmem>>, vector<1x1024xf32>
    tpu.vector_store %arg16[%c0_22, %c0_23], %47 {strides = array<i32>} : memref<1x1024xf32, #tpu.memory_space<vmem>>, vector<1x1024xf32>,
    %c0_i32_24 = arith.constant 0 : i32
    %49 = arith.cmpi eq, %arg1, %c0_i32_24 : i32
    %50 = arith.extui %49 : i1 to i32
    %c0_i32_25 = arith.constant 0 : i32
    %51 = arith.cmpi ne, %50, %c0_i32_25 : i32
    scf.if %51 {
      %c0_26 = arith.constant 0 : index
      %c0_27 = arith.constant 0 : index
      %52 = vector.load %arg16[%c0_26, %c0_27] : memref<1x1024xf32, #tpu.memory_space<vmem>>, vector<1x1024xf32>
      %53 = arith.truncf %52 : vector<1x1024xf32> to vector<1x1024xbf16>
      %c0_28 = arith.constant 0 : index
      %c0_29 = arith.constant 0 : index
      %54 = vector.load %arg9[%c0_28, %c0_29] : memref<1024x512xbf16, #tpu.memory_space<vmem>>, vector<1024x512xbf16>
      %cst_30 = arith.constant dense<0.000000e+00> : vector<1x512xf32>
      %55 = tpu.matmul %53, %54, %cst_30 {dimension_numbers = #tpu.dot_dimension_numbers<[1], [0], [0], [1], [0, 0, 1, 1], [], []>} : vector<1x1024xbf16>, vector<1024x512xbf16>, vector<1x512xf32> -> vector<1x512xf32>
      %c0_31 = arith.constant 0 : index
      %c0_32 = arith.constant 0 : index
      %56 = vector.load %arg10[%c0_31, %c0_32] : memref<1x512xf32, #tpu.memory_space<vmem>>, vector<1x512xf32>
      %57 = arith.addf %55, %56 : vector<1x512xf32>
      %cst_33 = arith.constant 0.000000e+00 : f32
      %58 = vector.broadcast %cst_33 : f32 to vector<1x512xf32>
      %59 = arith.maximumf %57, %58 : vector<1x512xf32>
      %60 = arith.truncf %59 : vector<1x512xf32> to vector<1x512xbf16>
      %c0_34 = arith.constant 0 : index
      %c0_35 = arith.constant 0 : index
      %61 = vector.load %arg11[%c0_34, %c0_35] : memref<512x256xbf16, #tpu.memory_space<vmem>>, vector<512x256xbf16>
      %cst_36 = arith.constant dense<0.000000e+00> : vector<1x256xf32>
      %62 = tpu.matmul %60, %61, %cst_36 {dimension_numbers = #tpu.dot_dimension_numbers<[1], [0], [0], [1], [0, 0, 1, 1], [], []>} : vector<1x512xbf16>, vector<512x256xbf16>, vector<1x256xf32> -> vector<1x256xf32>
      %c0_37 = arith.constant 0 : index
      %c0_38 = arith.constant 0 : index
      %63 = vector.load %arg12[%c0_37, %c0_38] : memref<1x256xf32, #tpu.memory_space<vmem>>, vector<1x256xf32>
      %64 = arith.addf %62, %63 : vector<1x256xf32>
      %cst_39 = arith.constant 0.000000e+00 : f32
      %65 = vector.broadcast %cst_39 : f32 to vector<1x256xf32>
      %66 = arith.maximumf %64, %65 : vector<1x256xf32>
      %67 = arith.truncf %66 : vector<1x256xf32> to vector<1x256xbf16>
      %c0_40 = arith.constant 0 : index
      %c0_41 = arith.constant 0 : index
      %68 = vector.load %arg13[%c0_40, %c0_41] : memref<256x9xbf16, #tpu.memory_space<vmem>>, vector<256x9xbf16>
      %cst_42 = arith.constant dense<0.000000e+00> : vector<1x9xf32>
      %69 = tpu.matmul %67, %68, %cst_42 {dimension_numbers = #tpu.dot_dimension_numbers<[1], [0], [0], [1], [0, 0, 1, 1], [], []>} : vector<1x256xbf16>, vector<256x9xbf16>, vector<1x9xf32> -> vector<1x9xf32>
      %c0_43 = arith.constant 0 : index
      %c0_44 = arith.constant 0 : index
      %70 = vector.load %arg14[%c0_43, %c0_44] : memref<1x9xf32, #tpu.memory_space<vmem>>, vector<1x9xf32>
      %71 = arith.addf %69, %70 : vector<1x9xf32>
      %c0_45 = arith.constant 0 : index
      %c0_46 = arith.constant 0 : index
      %c0_47 = arith.constant 0 : index
      %72 = vector.load %arg15[%c0_45, %c0_46, %c0_47] : memref<1x1x9xf32, #tpu.memory_space<vmem>>, vector<1x1x9xf32>
      %73 = vector.shape_cast %72 : vector<1x1x9xf32> to vector<1x9xf32>
      %74 = vector.shape_cast %71 : vector<1x9xf32> to vector<1x1x9xf32>
      tpu.vector_store %arg15[%c0_45, %c0_46, %c0_47], %74 {strides = array<i32>} : memref<1x1x9xf32, #tpu.memory_space<vmem>>, vector<1x1x9xf32>,
    } else {
    }
    return
  }
  func.func @transform_0(%arg0: i32, %arg1: i32) -> (i32, i32, i32) {
    %c0_i32 = arith.constant 0 : i32
    %c0_i32_0 = arith.constant 0 : i32
    return %arg0, %arg1, %c0_i32 : i32, i32, i32
  }
  func.func @transform_1(%arg0: i32, %arg1: i32) -> (i32, i32) {
    %c0_i32 = arith.constant 0 : i32
    %c0_i32_0 = arith.constant 0 : i32
    %c0_i32_1 = arith.constant 0 : i32
    return %c0_i32, %c0_i32_0 : i32, i32
  }
  func.func @transform_2(%arg0: i32, %arg1: i32) -> (i32, i32) {
    %c0_i32 = arith.constant 0 : i32
    %c0_i32_0 = arith.constant 0 : i32
    %c0_i32_1 = arith.constant 0 : i32
    return %c0_i32, %c0_i32_0 : i32, i32
  }
  func.func @transform_3(%arg0: i32, %arg1: i32) -> (i32, i32) {
    %c0_i32 = arith.constant 0 : i32
    %c0_i32_0 = arith.constant 0 : i32
    %c0_i32_1 = arith.constant 0 : i32
    return %c0_i32, %c0_i32_0 : i32, i32
  }
  func.func @transform_4(%arg0: i32, %arg1: i32) -> (i32, i32) {
    %c0_i32 = arith.constant 0 : i32
    %c0_i32_0 = arith.constant 0 : i32
    %c0_i32_1 = arith.constant 0 : i32
    return %c0_i32, %c0_i32_0 : i32, i32
  }
  func.func @transform_5(%arg0: i32, %arg1: i32) -> (i32, i32) {
    %c0_i32 = arith.constant 0 : i32
    %c0_i32_0 = arith.constant 0 : i32
    %c0_i32_1 = arith.constant 0 : i32
    return %c0_i32, %c0_i32_0 : i32, i32
  }
  func.func @transform_6(%arg0: i32, %arg1: i32) -> (i32, i32) {
    %c0_i32 = arith.constant 0 : i32
    %c0_i32_0 = arith.constant 0 : i32
    %c0_i32_1 = arith.constant 0 : i32
    return %c0_i32, %c0_i32_0 : i32, i32
  }
  func.func @transform_7(%arg0: i32, %arg1: i32) -> (i32, i32) {
    %c0_i32 = arith.constant 0 : i32
    %c0_i32_0 = arith.constant 0 : i32
    %c0_i32_1 = arith.constant 0 : i32
    return %c0_i32, %c0_i32_0 : i32, i32
  }
  func.func @transform_8(%arg0: i32, %arg1: i32) -> (i32, i32) {
    %c0_i32 = arith.constant 0 : i32
    %c0_i32_0 = arith.constant 0 : i32
    %c0_i32_1 = arith.constant 0 : i32
    return %c0_i32, %c0_i32_0 : i32, i32
  }
  func.func @transform_9(%arg0: i32, %arg1: i32) -> (i32, i32) {
    %c0_i32 = arith.constant 0 : i32
    %c0_i32_0 = arith.constant 0 : i32
    %c0_i32_1 = arith.constant 0 : i32
    return %c0_i32, %c0_i32_0 : i32, i32
  }
  func.func @transform_10(%arg0: i32, %arg1: i32) -> (i32, i32) {
    %c0_i32 = arith.constant 0 : i32
    %c0_i32_0 = arith.constant 0 : i32
    %c0_i32_1 = arith.constant 0 : i32
    return %c0_i32, %c0_i32_0 : i32, i32
  }
  func.func @transform_11(%arg0: i32, %arg1: i32) -> (i32, i32) {
    %c0_i32 = arith.constant 0 : i32
    %c0_i32_0 = arith.constant 0 : i32
    %c0_i32_1 = arith.constant 0 : i32
    return %c0_i32, %c0_i32_0 : i32, i32
  }
  func.func @transform_12(%arg0: i32, %arg1: i32) -> (i32, i32) {
    %c0_i32 = arith.constant 0 : i32
    %c0_i32_0 = arith.constant 0 : i32
    %c0_i32_1 = arith.constant 0 : i32
    return %c0_i32, %c0_i32_0 : i32, i32
  }
  func.func @transform_13(%arg0: i32, %arg1: i32) -> (i32, i32, i32) {
    %c0_i32 = arith.constant 0 : i32
    %c0_i32_0 = arith.constant 0 : i32
    %c0_i32_1 = arith.constant 0 : i32
    return %arg0, %c0_i32, %c0_i32_0 : i32, i32, i32
  }
}

</mosaic_0001>

<bundles_post_ra>
// kernel: trans_layer_forward.1
= control target key start
LH: loop header
LB: loop body
LE: loop exit
PB: predicated region body
PF: predicated region fallthrough
CT: control target
= control target key end

     0   :  { %s5691_s0 = inlined_call_operand.vmem [shape: f32[2,16,3], index: 0, kind: input, shape index: {}]   ;;  %s5692_s1 = inlined_call_operand.vmem [shape: f32[3,64], index: 1, kind: input, shape index: {}]   ;;  %s5693_s2 = inlined_call_operand.vmem [shape: f32[1,64], index: 2, kind: input, shape index: {}]   ;;  %s5694_s3 = inlined_call_operand.vmem [shape: bf16[64,128], index: 3, kind: input, shape index: {}]   ;;  %s5695_s4 = inlined_call_operand.vmem [shape: f32[1,128], index: 4, kind: input, shape index: {}]   ;;  %s5696_s5 = inlined_call_operand.hbm [shape: bf16[128,1024], index: 5, kind: input, shape index: {}]   ;;  %s5697_s6 = inlined_call_operand.vmem [shape: f32[1,1024], index: 6, kind: input, shape index: {}]   ;;  %s5698_s7 = inlined_call_operand.hbm [shape: bf16[1024,512], index: 7, kind: input, shape index: {}]   ;;  %s5699_s8 = inlined_call_operand.vmem [shape: f32[1,512], index: 8, kind: input, shape index: {}]   ;;  %s5700_s9 = inlined_call_operand.hbm [shape: bf16[512,256], index: 9, kind: input, shape index: {}]   ;;  %s5701_s10 = inlined_call_operand.vmem [shape: f32[1,256], index: 10, kind: input, shape index: {}]   ;;  %s5702_s11 = inlined_call_operand.vmem [shape: bf16[256,9], index: 11, kind: input, shape index: {}]   ;;  %s5703_s12 = inlined_call_operand.vmem [shape: f32[1,9], index: 12, kind: input, shape index: {}]   ;;  %s5704_s13 = inlined_call_operand.vmem [shape: f32[2,1,9], index: 13, kind: output, shape index: {}]  }
   0x1   :  { %5710 = sst [smem:[#allocation12_spill]] %s5701_s10 }
   0x2   :  { %5711 = sst [smem:[#allocation13_spill]] %s5703_s12 }
   0x3   :  { %5712 = sst [smem:[#allocation14_spill]] %s5704_s13 }
   0x4   :  { %18 = vsyncpa [#allocation4], 0 }
   0x5   :  { %19 = vsyncpa [#allocation6], 0  ;;  %s5357_s25 = smov 0   ;;  %s5359_s26 = smov 0  }
   0x6   :  { %s5361_s27 = smov 0  }
   0x7 LB: > { %5713 = sst [smem:[#allocation10_spill]] %s5266_s26  ;;  %s5272_s28 = smov [#allocation5]   ;;  %s5270_s27 = sphi %s5361_s27, %s25_s27   ;;  %s5266_s26 = sphi %s5359_s26, %s5727_s26   ;;  %s5262_s25 = sphi %s5357_s25, %s5726_s25  }
   0x8   : > { %5714 = sst [smem:[#allocation11_spill]] %s5270_s27  ;;  %s388_s29 = sshll.u32 %s5272_s28, 4  ;;  %s5379_s29 = int_to_ptr.vmem [resolvable:$true] %s388_s29 }
   0x9   : > { %s4089_s30 = sadd.s32 4294967295, %s5270_s27   ;;  %p4091_p0 = scmp.ge.s32.totalorder %s5270_s27, 1 }
   0xa   : > { %p348_p1 = scmp.lt.s32.totalorder %s5270_s27, 3  ;;  %p5375_p2 = scmp.eq.s32.totalorder %s4089_s30, 0 }
   0xb   : > { %s37_s17 = sadd.s32 1, %s5266_s26  ;;  %s5273_s19 = smov [#allocation3]  }
   0xc   : > { %s5715_s14 = scalar_select %p5375_p2, 1, 0 }
   0xd   : > { %p5381_p3 = pnand %p4091_p0, %p348_p1  ;;  %p5394_p6 = scmp.ge.s32.totalorder %s37_s17, 2 }
   0xe   : > { %s372_s20 = sshll.u32 %s5273_s19, 4  ;;  %s5156_s23 = scalar_lea.hbm %s5698_s7, 32768  ;;  %s373_s20 = int_to_ptr.vmem [resolvable:$true] %s372_s20 }
   0xf   : > { %s5716_s15 = scalar_select %p5381_p3, 1, 0 }
  0x10   : > { %p4597_p4 = pneg %p5381_p3  ;;  %p5157_p7 = scmp.ne.s32.totalorder %s5698_s7, %s5156_s23 }
  0x11   : > { %p5163_p11 = scmp.lt.u32.totalorder %s5156_s23, %s5698_s7 }
  0x12   : > { %p5389_p5 = pnand %p5375_p2, %p4597_p4 }
  0x14   : > { %p5406_p8 = pneg %p5389_p5 }
  0x16   : > { %p5159_p9 = pnand %p5406_p8, %p5157_p7 }
  0x18   : > { %p5160_p10 = pneg %p5159_p9 }
  0x1a   : > { %p5165_p12 = pnand %p5163_p11, %p5160_p10 }
  0x1c   : > { %5168 = shalt.err (!%p5165_p12)
}
  0x1d   : > { %s5169_s19 = scalar_lea.vmem %s5379_s29, 32768  ;;  %p5177_p4 = scmp.lt.s32.totalorder %s5379_s29, %s5379_s29 }
  0x1e   : > { %p5170_p13 = scmp.ne.s32.totalorder %s5379_s29, %s5169_s19  ;;  %p5178_p2 = scmp.lt.s32.totalorder %s5169_s19, %s5169_s19 }
  0x20   : > { %p5172_p0 = pnand %p5170_p13, %p5406_p8  ;;  %p5179_p7 = por %p5178_p2, %p5177_p4 }
  0x22   : > { %p5173_p1 = pneg %p5172_p0 }
  0x24   : > { %p5180_p9 = pnand %p5179_p7, %p5173_p1 }
  0x26   : > { %5183 = shalt.err (!%p5180_p9)
}
  0x27   : > { %s5274_s21 = smov 256   ;;  %s5275_s26 = smov 16  }
  0x28   : > { %4603 = dma.hbm_to_vmem [thread:$0]  (!%p5389_p5), %s5698_s7, 32768, %s5379_s29, [#allocation6], %s5274_s21, %s5274_s21, %s5275_s26  }
  0x29   : > { %s5729_s17 = smov (%p5394_p6, %s37_s17), 0  ;;  %s5184_s28 = scalar_lea.hbm %s5696_s5, 8192 }
  0x2a   : > { %p5185_p2 = scmp.ne.s32.totalorder %s5696_s5, %s5184_s28  ;;  %p5191_p12 = scmp.lt.u32.totalorder %s5184_s28, %s5696_s5 }
  0x2c   : > { %p5187_p10 = pnand %p5185_p2, %p5406_p8 }
  0x2e   : > { %p5188_p11 = pneg %p5187_p10 }
  0x30   : > { %p5193_p13 = pnand %p5191_p12, %p5188_p11 }
  0x32   : > { %5196 = shalt.err (!%p5193_p13)
}
  0x33   : > { %s5197_s29 = scalar_lea.vmem %s373_s20, 8192  ;;  %p5205_p4 = scmp.lt.s32.totalorder %s373_s20, %s373_s20 }
  0x34   : > { %p5198_p6 = scmp.ne.s32.totalorder %s373_s20, %s5197_s29  ;;  %p5206_p7 = scmp.lt.s32.totalorder %s5197_s29, %s5197_s29 }
  0x36   : > { %p5200_p0 = pnand %p5198_p6, %p5406_p8  ;;  %p5207_p9 = por %p5206_p7, %p5205_p4 }
  0x38   : > { %p5201_p1 = pneg %p5200_p0 }
  0x3a   : > { %p5208_p3 = pnand %p5207_p9, %p5201_p1 }
  0x3c   : > { %5211 = shalt.err (!%p5208_p3)
}
  0x3d   : > { %s5276_s13 = smov 512   ;;  %s5277_s18 = smov 32  }
  0x3e   : > { %4600 = dma.hbm_to_vmem [thread:$0]  (!%p5389_p5), %s5696_s5, 8192, %s373_s20, [#allocation4], %s5276_s13, %s5276_s13, %s5277_s18  }
  0x3f   : > { %s5278_s21 = smov [#allocation7]   ;;  %s5212_s23 = scalar_lea.hbm %s5700_s9, 8192 }
  0x40   : > { %s404_s26 = sshll.u32 %s5278_s21, 4  ;;  %p5213_p3 = scmp.ne.s32.totalorder %s5700_s9, %s5212_s23  ;;  %s405_s26 = int_to_ptr.vmem [resolvable:$true] %s404_s26 }
  0x41   : > { %p5219_p11 = scmp.lt.u32.totalorder %s5212_s23, %s5700_s9 }
  0x42   : > { %p5215_p2 = pnand %p5213_p3, %p5406_p8 }
  0x44   : > { %p5216_p10 = pneg %p5215_p2 }
  0x46   : > { %p5221_p12 = pnand %p5219_p11, %p5216_p10 }
  0x48   : > { %5224 = shalt.err (!%p5221_p12)
}
  0x49   : > { %s5225_s20 = scalar_lea.vmem %s405_s26, 8192  ;;  %p5233_p1 = scmp.lt.s32.totalorder %s405_s26, %s405_s26 }
  0x4a   : > { %p5226_p13 = scmp.ne.s32.totalorder %s405_s26, %s5225_s20  ;;  %p5234_p4 = scmp.lt.s32.totalorder %s5225_s20, %s5225_s20 }
  0x4c   : > { %p5228_p6 = pnand %p5226_p13, %p5406_p8  ;;  %p5235_p7 = por %p5234_p4, %p5233_p1 }
  0x4e   : > { %p5229_p0 = pneg %p5228_p6 }
  0x50   : > { %p5236_p9 = pnand %p5235_p7, %p5229_p0 }
  0x52   : > { %5239 = shalt.err (!%p5236_p9)
}
  0x53   : > { %s5279_s13 = smov 128   ;;  %s5280_s18 = smov 8  }
  0x54   : > { %4606 = dma.hbm_to_vmem [thread:$0]  (!%p5389_p5), %s5700_s9, 8192, %s405_s26, [#allocation6], %s5279_s13, %s5279_s13, %s5280_s18  }
  0x55   : > { %p5720_p3 = scmp.ne.s32.totalorder %s5716_s15, 0 }
  0x56   : > { %p5721_p2 = scmp.ne.s32.totalorder (!%p5720_p3), %s5715_s14, 0 }
  0x57   : > { %442 = sbr.rel (%p5720_p3) target bundleno = 1696 (0x6a0), region = 72 }
  0x5e   : > { %5253 = dma.done.wait (%p5721_p2), [#allocation4], 8192  }
  0x5f   : > { %5255 = vsyncadd (%p5721_p2), [#allocation4], 4294959104 }
  0x60   : > { %5257 = dma.done.wait (%p5721_p2), [#allocation6], 40960  }
  0x61   : > { %5259 = vsyncadd (%p5721_p2), [#allocation6], 4294926336  ;;  %p497_p8 = scmp.lt.s32.totalorder %s5262_s25, 1  ;;  %v5281_v0 = vmov 1   ;;  %v5282_v1 = vmov 0   ;;  %v4656_v4 = vld [vmem:[%s5694_s3] sm:$0xff]   ;;  %v528_v38 = vlaneseq }
  0x62   : > { %4653 = vset.pattern.permute.xlu1 %v5281_v0  ;;  %4652 = vset.pattern.permute.xlu0 %v5282_v1  ;;  %v5283_v5 = vmov 0.0   ;;  %v4657_v6 = vld [vmem:[%s5694_s3 + $0x8] sm:$0xff]   ;;  %v5284_v7 = vmov 2   ;;  %v4658_v8 = vld [vmem:[%s5694_s3 + $0x10] sm:$0xff]   ;;  %v4659_v9 = vld [vmem:[%s5694_s3 + $0x18] sm:$0xff]   ;;  %vm5285_vm0 = vmmov 0  }
  0x63   : > { %s5731_s25 = smov (!%p497_p8, %s5262_s25), 1  ;;  %1209 = vmatprep.mubr.bf16.mxu1 %v5282_v1  ;;  %4539 = vmatprep.subr.bf16.mxu0 %v5283_v5  ;;  %v5499_v10 = vld [vmem:[#allocation3] sm:$0xff]  ;;  %v667_v14 = vld [vmem:[#allocation3 + $0x10] sm:$0xff]  ;;  %v5507_v39 = vshrl.u32 %v528_v38, 7  ;;  %vm617_vm1 = vcmask 523264   ;;  %s5722_s30 = sld [smem:[#allocation12_spill]] }
  0x64   : > { %s4511_s15 = sshll.u32 %s5731_s25, 4  ;;  %4540 = vmatpush3.bf16.msra.mxu0 %v4656_v4  ;;  %4547 = vmatprep.mubr.msk.bf16.mxu0 %vm5285_vm0, %v5283_v5  ;;  %v5501_v11 = vld [vmem:[#allocation3 + $0x20] sm:$0xff]  ;;  %v671_v15 = vld [vmem:[#allocation3 + $0x30] sm:$0xff]  ;;  %s5723_s26 = sld [smem:[#allocation13_spill]]  ;;  %vm3994_vm2 = vcmask 65536  }
  0x65   : > { %s504_s21 = scalar_lea.vmem %s5691_s0, %s4511_s15  ;;  %4541 = vmatprep.subr.bf16.mxu0 %v5283_v5  ;;  %v4109_v12 = vcombine.low %v5499_v10, %v5501_v11  ;;  %v4110_v13 = vcombine.high %v5499_v10, %v5501_v11  ;;  %v4114_v16 = vcombine.high %v667_v14, %v671_v15  ;;  %v4113_v17 = vcombine.low %v667_v14, %v671_v15  ;;  %v675_v18 = vld [vmem:[#allocation3 + $0x50] sm:$0xff]  ;;  %v517_v43 = vld [vmem:[%s5692_s1] sm:$0x7]  ;;  %s5724_s23 = sld [smem:[#allocation14_spill]] }
  0x66   : > { %v515_v2 = vld [vmem:[%s504_s21] sm:$0xff]  ;;  %v516_v3 = vld [vmem:[%s504_s21 + $0x8] sm:$0xff]  ;;  %v679_v19 = vld [vmem:[#allocation3 + $0x70] sm:$0xff]  ;;  %v5510_v40 = vsub.s32 1, %v5507_v39  ;;  %v5513_v41 = vsub.s32 0, %v5507_v39  ;;  %v5516_v42 = vsub.s32 2, %v5507_v39 }
  0x67   : > { %535 = vperm.xlu1 %4653, %v515_v2   ;;  %520 = vperm.xlu0 %4652, %v515_v2   ;;  %v4122_v20 = vcombine.high %v675_v18, %v679_v19  ;;  %v4121_v21 = vcombine.low %v675_v18, %v679_v19  ;;  %v683_v22 = vld [vmem:[#allocation3 + $0x90] sm:$0xff]  ;;  %v4102_v61 = vld [vmem:[%s5693_s2] ss:$0 sm:$0xff] }
  0x68   : > { %4542 = vmatpush3.bf16.msra.mxu0 %v4657_v6  ;;  %1177 = vmatprep.subr.bf16.mxu1 %v4114_v16  ;;  %v687_v23 = vld [vmem:[#allocation3 + $0xb0] sm:$0xff]  ;;  %v545_v46 = vrot.slane %v517_v43, %v5510_v40  ;;  %v531_v47 = vrot.slane %v517_v43, %v5513_v41  ;;  %v561_v50 = vrot.slane %v517_v43, %v5516_v42  ;;  %v677_v4 = vld [vmem:[#allocation3 + $0x60] sm:$0xff] }
  0x69   : > { %4543 = vmatprep.subr.bf16.mxu0 %v5283_v5  ;;  %1178 = vmatpush1.bf16.msra.mxu1 %v4113_v17  ;;  %v4130_v24 = vcombine.high %v683_v22, %v687_v23  ;;  %v4129_v25 = vcombine.low %v683_v22, %v687_v23  ;;  %v691_v26 = vld [vmem:[#allocation3 + $0xd0] sm:$0xff]  ;;  %v689_v16 = vld [vmem:[#allocation3 + $0xc0] sm:$0xff] }
  0x6a   : > { %1179 = vmatprep.subr.bf16.mxu1 %v4122_v20  ;;  %v695_v27 = vld [vmem:[#allocation3 + $0xf0] sm:$0xff]  ;;  %v693_v17 = vld [vmem:[#allocation3 + $0xe0] sm:$0xff] }
  0x6b   : > { %539 = vperm.xlu1 %4653, %v516_v3   ;;  %525 = vperm.xlu0 %4652, %v516_v3   ;;  %v4138_v28 = vcombine.high %v691_v26, %v695_v27  ;;  %v4137_v29 = vcombine.low %v691_v26, %v695_v27  ;;  %v699_v30 = vld [vmem:[#allocation3 + $0x110] sm:$0xff]  ;;  %v4134_v19 = vcombine.high %v689_v16, %v693_v17  ;;  %v697_v20 = vld [vmem:[#allocation3 + $0x100] sm:$0xff]  ;;  %s508_s24 = scalar_lea.vmem %s5724_s23, %s5731_s25 }
  0x6c   : > { %4544 = vmatpush3.bf16.msra.mxu0 %v4658_v8  ;;  %v703_v31 = vld [vmem:[#allocation3 + $0x130] sm:$0xff]  ;;  %v4133_v22 = vcombine.low %v689_v16, %v693_v17  ;;  %v709_v10 = vld [vmem:[#allocation3 + $0x160] sm:$0xff]  ;;  %v710_v16 = vld [vmem:[#allocation3 + $0x168] sm:$0xff] }
  0x6d   : > { %4545 = vmatprep.subr.bf16.mxu0 %v5283_v5  ;;  %1180 = vmatpush1.bf16.msra.mxu1 %v4121_v21  ;;  %v4146_v32 = vcombine.high %v699_v30, %v703_v31  ;;  %v4145_v33 = vcombine.low %v699_v30, %v703_v31  ;;  %v707_v34 = vld [vmem:[#allocation3 + $0x150] sm:$0xff]  ;;  %v701_v21 = vld [vmem:[#allocation3 + $0x120] sm:$0xff] }
  0x6e   : > { %1181 = vmatprep.subr.bf16.mxu1 %v4130_v24  ;;  %v711_v35 = vld [vmem:[#allocation3 + $0x170] sm:$0xff]  ;;  %v4142_v23 = vcombine.high %v697_v20, %v701_v21  ;;  %v705_v24 = vld [vmem:[#allocation3 + $0x140] sm:$0xff]  ;;  %v4141_v11 = vcombine.low %v697_v20, %v701_v21  ;;  %v718_v20 = vld [vmem:[#allocation3 + $0x1a8] sm:$0xff] }
  0x6f   : > { %4655 = vset.pattern.permute.xlu1 %v5284_v7  ;;  %4654 = vset.pattern.permute.xlu0 %v5284_v7  ;;  %v4154_v36 = vcombine.high %v707_v34, %v711_v35  ;;  %v4153_v37 = vcombine.low %v707_v34, %v711_v35  ;;  %v713_v26 = vld [vmem:[#allocation3 + $0x180] sm:$0xff]  ;;  %v719_v30 = vld [vmem:[#allocation3 + $0x1b0] sm:$0xff] }
  0x70   : > { %555 = vperm.xlu1 %4655, %v516_v3   ;;  %551 = vperm.xlu0 %4654, %v515_v2   ;;  %v673_v3 = vld [vmem:[#allocation3 + $0x40] sm:$0xff]  ;;  %v727_v38 = vld [vmem:[#allocation3 + $0x1f0] sm:$0xff] }
  0x71   : > { %4546 = vmatpush3.bf16.msra.mxu0 %v4659_v9  ;;  %1182 = vmatpush1.bf16.msra.mxu1 %v4129_v25  ;;  %v4118_v8 = vcombine.high %v673_v3, %v677_v4  ;;  %v681_v9 = vld [vmem:[#allocation3 + $0x80] sm:$0xff]  ;;  %v4117_v14 = vcombine.low %v673_v3, %v677_v4  ;;  %v4149_v25 = vcombine.low %v705_v24, %v709_v10  ;;  %v690_v4 = vld [vmem:[#allocation3 + $0xc8] sm:$0xff] }
  0x72   : > { %1091 = vmatprep.subr.bf16.mxu0 %v4110_v13  ;;  %1183 = vmatprep.subr.bf16.mxu1 %v4138_v28  ;;  %v685_v13 = vld [vmem:[#allocation3 + $0xa0] sm:$0xff] }
  0x73   : > { %v4126_v15 = vcombine.high %v681_v9, %v685_v13  ;;  %v4125_v18 = vcombine.low %v681_v9, %v685_v13  ;;  %v717_v27 = vld [vmem:[#allocation3 + $0x1a0] sm:$0xff]  ;;  %v702_v9 = vld [vmem:[#allocation3 + $0x128] sm:$0xff] }
  0x74   : > { %v4158_v28 = vcombine.high %v713_v26, %v717_v27  ;;  %v4157_v31 = vcombine.low %v713_v26, %v717_v27  ;;  %v721_v34 = vld [vmem:[#allocation3 + $0x1c0] sm:$0xff] }
  0x75   : > { %1184 = vmatpush1.bf16.msra.mxu1 %v4137_v29  ;;  %v715_v29 = vld [vmem:[#allocation3 + $0x190] sm:$0xff]  ;;  %v725_v35 = vld [vmem:[#allocation3 + $0x1e0] sm:$0xff] }
  0x76   : > { %1185 = vmatprep.subr.bf16.mxu1 %v4146_v32  ;;  %v4162_v32 = vcombine.high %v715_v29, %v719_v30  ;;  %v4165_v43 = vcombine.low %v721_v34, %v725_v35 }
  0x79   : > { %1186 = vmatpush1.bf16.msra.mxu1 %v4145_v33  ;;  %v4161_v33 = vcombine.low %v715_v29, %v719_v30  ;;  %v680_v29 = vld [vmem:[#allocation3 + $0x78] sm:$0xff] }
  0x7a   : > { %1187 = vmatprep.subr.bf16.mxu1 %v4154_v36  ;;  %v4166_v36 = vcombine.high %v721_v34, %v725_v35 }
  0x7d   : > { %1188 = vmatpush1.bf16.msra.mxu1 %v4153_v37  ;;  %v723_v37 = vld [vmem:[#allocation3 + $0x1d0] sm:$0xff] }
  0x7e   : > { %1189 = vmatprep.subr.bf16.mxu1 %v4162_v32  ;;  %v684_v32 = vld [vmem:[#allocation3 + $0x98] sm:$0xff] }
  0x81   : > { %1190 = vmatpush1.bf16.msra.mxu1 %v4161_v33  ;;  %v688_v33 = vld [vmem:[#allocation3 + $0xb8] sm:$0xff] }
  0x82   : > { %v4132_v35 = vcombine.high %v684_v32, %v688_v33 }
  0xe6   : > { %v536_v44 = vpop.permute.xlu1 %535  ;;  %v521_v45 = vpop.permute.xlu0 %520 }
  0xe7   : > { %v546_v51 = vmul.f32 %v545_v46, %v536_v44  ;;  %v532_v52 = vmul.f32 %v531_v47, %v521_v45  ;;  %v4170_v44 = vcombine.high %v723_v37, %v727_v38  ;;  %v4169_v45 = vcombine.low %v723_v37, %v727_v38  ;;  %v696_v37 = vld [vmem:[#allocation3 + $0xf8] sm:$0xff] }
  0xe8   : > { %v4131_v38 = vcombine.low %v684_v32, %v688_v33  ;;  %v4711_v32 = vld [vmem:[#allocation5 + $0x108] ss:$16 sps:$4 sm:$0xff]   ;;  %v4716_v33 = vld [vmem:[#allocation5 + $0x124] ss:$16 sps:$4 sm:$0xff]  }
  0xe9   : > { %v548_v57 = vadd.f32 %v546_v51, %v532_v52  ;;  %1191 = vmatprep.subr.bf16.mxu1 %v4170_v44  ;;  %v700_v44 = vld [vmem:[#allocation3 + $0x118] sm:$0xff] }
  0xea   : > { %v540_v48 = vpop.permute.xlu1 %539  ;;  %v526_v49 = vpop.permute.xlu0 %525  ;;  %1192 = vmatpush1.bf16.msra.mxu1 %v4169_v45  ;;  %v704_v45 = vld [vmem:[#allocation3 + $0x138] sm:$0xff] }
  0xeb   : > { %v547_v53 = vmul.f32 %v545_v46, %v540_v48  ;;  %v533_v54 = vmul.f32 %v531_v47, %v526_v49  ;;  %v666_v46 = vld [vmem:[#allocation3 + $0x8] sm:$0xff] }
  0xec   : > { %v670_v47 = vld [vmem:[#allocation3 + $0x28] sm:$0xff] }
  0xed   : > { %v549_v58 = vadd.f32 %v547_v53, %v533_v54  ;;  %v4112_v48 = vcombine.high %v666_v46, %v670_v47  ;;  %v4111_v49 = vcombine.low %v666_v46, %v670_v47  ;;  %v4148_v47 = vcombine.high %v700_v44, %v704_v45 }
  0xef   : > { %v556_v55 = vpop.permute.xlu1 %555  ;;  %v552_v56 = vpop.permute.xlu0 %551 }
  0xf0   : > { %v563_v59 = vmul.f32 %v561_v50, %v556_v55  ;;  %v562_v60 = vmul.f32 %v561_v50, %v552_v56  ;;  %v4103_v50 = vld [vmem:[%s5695_s4] ss:$0 sm:$0xff] }
  0xf2   : > { %v565_v62 = vadd.f32 %v563_v59, %v549_v58  ;;  %v564_v63 = vadd.f32 %v562_v60, %v548_v57  ;;  %v674_v57 = vld [vmem:[#allocation3 + $0x48] sm:$0xff] }
  0xf3   : > { %v678_v58 = vld [vmem:[#allocation3 + $0x68] sm:$0xff] }
  0xf4   : > { %v574_v0 = vadd.f32 %v4102_v61, %v565_v62  ;;  %v573_v2 = vadd.f32 %v4102_v61, %v564_v63  ;;  %v4120_v62 = vcombine.high %v674_v57, %v678_v58  ;;  %v682_v63 = vld [vmem:[#allocation3 + $0x88] sm:$0xff] }
  0xf6   : > { %v576_v5 = vmax.f32 %v574_v0, 0.0  ;;  %v575_v6 = vmax.f32 %v573_v2, 0.0  ;;  %v686_v0 = vld [vmem:[#allocation3 + $0xa8] sm:$0xff]  ;;  %v4119_v2 = vcombine.low %v674_v57, %v678_v58 }
  0xf7   : > { %v4128_v3 = vcombine.high %v682_v63, %v686_v0 }
  0xf8   : > { %v577_v7 = vpack.c.bf16 %v576_v5, %v575_v6  ;;  %v694_v5 = vld [vmem:[#allocation3 + $0xe8] sm:$0xff]  ;;  %v4127_v6 = vcombine.low %v682_v63, %v686_v0  ;;  %v4660_v63 = vld [vmem:[#allocation5] ss:$16 sps:$4 sm:$0xff]  }
  0xf9   : > { %v4135_v13 = vcombine.low %v690_v4, %v694_v5  ;;  %v4663_v0 = vld [vmem:[#allocation5 + $0x8] ss:$16 sps:$4 sm:$0xff]  }
  0xfa   : > { %4548 = vmatmul.mubr.msk.bf16.vlgmr.msra.gmra.mrb[0].mxu0 %vm617_vm1, %v577_v7  ;;  %v4136_v7 = vcombine.high %v690_v4, %v694_v5  ;;  %v4666_v4 = vld [vmem:[#allocation5 + $0x20] ss:$16 sps:$4 sm:$0xff]   ;;  %v4669_v5 = vld [vmem:[#allocation5 + $0x28] ss:$16 sps:$4 sm:$0xff]  }
  0xfb   : > { %1092 = vmatpush1.bf16.msra.mxu0 %v4109_v12  ;;  %1123 = vmatprep.mubr.bf16.mxu0 %v5282_v1  ;;  %v4150_v12 = vcombine.high %v705_v24, %v709_v10  ;;  %v726_v24 = vld [vmem:[#allocation3 + $0x1e8] sm:$0xff] }
  0xfc   : > { %1093 = vmatprep.subr.bf16.mxu0 %v4118_v8  ;;  %v698_v8 = vld [vmem:[#allocation3 + $0x108] sm:$0xff] }
  0xfd   : > { %v4143_v17 = vcombine.low %v698_v8, %v702_v9 }
  0xff   : > { %1094 = vmatpush1.bf16.msra.mxu0 %v4117_v14  ;;  %v4144_v14 = vcombine.high %v698_v8, %v702_v9  ;;  %v4672_v8 = vld [vmem:[#allocation5 + $0x40] ss:$16 sps:$4 sm:$0xff]   ;;  %v4680_v9 = vld [vmem:[#allocation5 + $0x64] ss:$16 sps:$4 sm:$0xff]  }
 0x100   : > { %1095 = vmatprep.subr.bf16.mxu0 %v4126_v15  ;;  %v706_v15 = vld [vmem:[#allocation3 + $0x148] sm:$0xff] }
 0x101   : > { %v4151_v21 = vcombine.low %v706_v15, %v710_v16 }
 0x103   : > { %1096 = vmatpush1.bf16.msra.mxu0 %v4125_v18  ;;  %v4152_v18 = vcombine.high %v706_v15, %v710_v16  ;;  %v4681_v15 = vld [vmem:[#allocation5 + $0x68] ss:$16 sps:$4 sm:$0xff]   ;;  %v4686_v16 = vld [vmem:[#allocation5 + $0x84] ss:$16 sps:$4 sm:$0xff]  }
 0x104   : > { %1097 = vmatprep.subr.bf16.mxu0 %v4134_v19  ;;  %v714_v19 = vld [vmem:[#allocation3 + $0x188] sm:$0xff] }
 0x105   : > { %v4159_v10 = vcombine.low %v714_v19, %v718_v20 }
 0x107   : > { %1098 = vmatpush1.bf16.msra.mxu0 %v4133_v22  ;;  %v4160_v22 = vcombine.high %v714_v19, %v718_v20  ;;  %v4687_v19 = vld [vmem:[#allocation5 + $0x88] ss:$16 sps:$4 sm:$0xff]   ;;  %v4692_v20 = vld [vmem:[#allocation5 + $0xa4] ss:$16 sps:$4 sm:$0xff]  }
 0x108   : > { %1099 = vmatprep.subr.bf16.mxu0 %v4142_v23  ;;  %v722_v23 = vld [vmem:[#allocation3 + $0x1c8] sm:$0xff] }
 0x109   : > { %v4167_v26 = vcombine.low %v722_v23, %v726_v24 }
 0x10b   : > { %1100 = vmatpush1.bf16.msra.mxu0 %v4141_v11  ;;  %v4168_v11 = vcombine.high %v722_v23, %v726_v24  ;;  %v4693_v23 = vld [vmem:[#allocation5 + $0xa8] ss:$16 sps:$4 sm:$0xff]   ;;  %v4698_v24 = vld [vmem:[#allocation5 + $0xc4] ss:$16 sps:$4 sm:$0xff]  }
 0x10c   : > { %1101 = vmatprep.subr.bf16.mxu0 %v4150_v12  ;;  %v668_v12 = vld [vmem:[#allocation3 + $0x18] sm:$0xff] }
 0x10f   : > { %1102 = vmatpush1.bf16.msra.mxu0 %v4149_v25  ;;  %v672_v25 = vld [vmem:[#allocation3 + $0x38] sm:$0xff] }
 0x110   : > { %1103 = vmatprep.subr.bf16.mxu0 %v4158_v28  ;;  %v4116_v27 = vcombine.high %v668_v12, %v672_v25  ;;  %v676_v28 = vld [vmem:[#allocation3 + $0x58] sm:$0xff]  ;;  %v4115_v30 = vcombine.low %v668_v12, %v672_v25  ;;  %v4704_v25 = vld [vmem:[#allocation5 + $0xe4] ss:$16 sps:$4 sm:$0xff]  }
 0x111   : > { %v4123_v34 = vcombine.low %v676_v28, %v680_v29  ;;  %v4699_v12 = vld [vmem:[#allocation5 + $0xc8] ss:$16 sps:$4 sm:$0xff]  }
 0x113   : > { %1104 = vmatpush1.bf16.msra.mxu0 %v4157_v31  ;;  %v4124_v31 = vcombine.high %v676_v28, %v680_v29  ;;  %v4705_v28 = vld [vmem:[#allocation5 + $0xe8] ss:$16 sps:$4 sm:$0xff]   ;;  %v4710_v29 = vld [vmem:[#allocation5 + $0x104] ss:$16 sps:$4 sm:$0xff]  }
 0x114   : > { %1105 = vmatprep.subr.bf16.mxu0 %v4166_v36  ;;  %v692_v36 = vld [vmem:[#allocation3 + $0xd8] sm:$0xff] }
 0x115   : > { %v4139_v46 = vcombine.low %v692_v36, %v696_v37 }
 0x117   : > { %1106 = vmatpush1.bf16.msra.mxu0 %v4165_v43  ;;  %v4140_v43 = vcombine.high %v692_v36, %v696_v37  ;;  %v4717_v36 = vld [vmem:[#allocation5 + $0x128] ss:$16 sps:$4 sm:$0xff]   ;;  %v4722_v37 = vld [vmem:[#allocation5 + $0x144] ss:$16 sps:$4 sm:$0xff]  }
 0x118   : > { %1134 = vmatprep.subr.bf16.mxu0 %v4112_v48  ;;  %v708_v48 = vld [vmem:[#allocation3 + $0x158] sm:$0xff] }
 0x1cd   : > { %v655_v51 = vpop.f32.mrb[0].mxu0 }
 0x1ce   : > { %v656_v52 = vadd.f32 %v4103_v50, %v655_v51  ;;  %v4549_v53 = vpop.f32.mrb[1].mxu0  ;;  %v716_v51 = vld [vmem:[#allocation3 + $0x198] sm:$0xff] }
 0x1cf   : > { %v658_v54 = vpop.f32.mrb[2].mxu0 }
 0x1d0   : > { %v659_v55 = vadd.f32 %v4103_v50, %v658_v54  ;;  %v4550_v56 = vpop.f32.mrb[3].mxu0  ;;  %v662_v59 = vmax.f32 %v656_v52, 0.0  ;;  %v4147_v50 = vcombine.low %v700_v44, %v704_v45  ;;  %v720_v52 = vld [vmem:[#allocation3 + $0x1b8] sm:$0xff]  ;;  %v4728_v45 = vld [vmem:[#allocation5 + $0x164] ss:$16 sps:$4 sm:$0xff]  }
 0x1d1   : > { %v4164_v54 = vcombine.high %v716_v51, %v720_v52  ;;  %v728_v56 = vld [vmem:[#allocation3 + $0x1f8] sm:$0xff]  ;;  %v4163_v57 = vcombine.low %v716_v51, %v720_v52  ;;  %v4740_v52 = vld [vmem:[#allocation5 + $0x1a4] ss:$16 sps:$4 sm:$0xff]  }
 0x1d2   : > { %v663_v60 = vmax.f32 %v659_v55, 0.0  ;;  %v724_v55 = vld [vmem:[#allocation3 + $0x1d8] sm:$0xff] }
 0x1d3   : > { %v4172_v58 = vcombine.high %v724_v55, %v728_v56  ;;  %v4723_v44 = vld [vmem:[#allocation5 + $0x148] ss:$16 sps:$4 sm:$0xff]  }
 0x1d4   : > { %v5534_v61 = vpack.c.bf16 %v663_v60, %v662_v59  ;;  %v4171_v59 = vcombine.low %v724_v55, %v728_v56  ;;  %v4662_v60 = vld [vmem:[#allocation5 + $0x4] ss:$16 sps:$4 sm:$0xff]   ;;  %v4735_v51 = vld [vmem:[#allocation5 + $0x188] ss:$16 sps:$4 sm:$0xff]  }
 0x1d5   : > { %3007 = vmatprep.subr.bf16.mxu1 %v4662_v60  ;;  %v4741_v55 = vld [vmem:[#allocation5 + $0x1a8] ss:$16 sps:$4 sm:$0xff]   ;;  %v4746_v56 = vld [vmem:[#allocation5 + $0x1c4] ss:$16 sps:$4 sm:$0xff]   ;;  %v4750_v60 = vld [vmem:[#allocation5 + $0x1e0] ss:$16 sps:$4 sm:$0xff]  }
 0x1d6   : > { %1124 = vmatmul.mubr.bf16.vlgmr.msra.gmra.mrb[4].mxu0 %v5534_v61  ;;  %1210 = vmatmul.mubr.bf16.vlgmr.msra.gmra.mrb[0].mxu1 %v5534_v61 }
 0x1d7   : > { %1135 = vmatpush1.bf16.msra.mxu0 %v4111_v49  ;;  %1166 = vmatprep.mubr.bf16.mxu0 %v5282_v1  ;;  %v712_v49 = vld [vmem:[#allocation3 + $0x178] sm:$0xff] }
 0x1d8   : > { %1136 = vmatprep.subr.bf16.mxu0 %v4120_v62  ;;  %v4155_v53 = vcombine.low %v708_v48, %v712_v49  ;;  %v4665_v62 = vld [vmem:[#allocation5 + $0xc] ss:$16 sps:$4 sm:$0xff]   ;;  %3008 = vmatpush1.bf16.msra.mxu1 %v4660_v63  ;;  %v4753_v63 = vld [vmem:[#allocation5 + $0x1e8] ss:$16 sps:$4 sm:$0xff]  }
 0x1db   : > { %1137 = vmatpush1.bf16.msra.mxu0 %v4119_v2  ;;  %v4668_v2 = vld [vmem:[#allocation5 + $0x24] ss:$16 sps:$4 sm:$0xff]  }
 0x1dc   : > { %1138 = vmatprep.subr.bf16.mxu0 %v4128_v3  ;;  %v4671_v3 = vld [vmem:[#allocation5 + $0x2c] ss:$16 sps:$4 sm:$0xff]   ;;  %3009 = vmatprep.subr.bf16.mxu1 %v4668_v2  ;;  %v4758_v2 = vld [vmem:[#allocation5 + $0x204] ss:$16 sps:$4 sm:$0xff]  }
 0x1dd   : > { %3010 = vmatpush1.bf16.msra.mxu1 %v4666_v4  ;;  %v749_v4 = vsub.s32 4, %v5507_v39 }
 0x1df   : > { %1139 = vmatpush1.bf16.msra.mxu0 %v4127_v6  ;;  %v4674_v6 = vld [vmem:[#allocation5 + $0x44] ss:$16 sps:$4 sm:$0xff]  }
 0x1e0   : > { %1140 = vmatprep.subr.bf16.mxu0 %v4136_v7  ;;  %v4677_v7 = vld [vmem:[#allocation5 + $0x4c] ss:$16 sps:$4 sm:$0xff]   ;;  %3011 = vmatprep.subr.bf16.mxu1 %v4674_v6  ;;  %v753_v6 = vsub.s32 5, %v5507_v39 }
 0x1e1   : > { %3012 = vmatpush1.bf16.msra.mxu1 %v4672_v8 }
 0x1e2   : > { %3013 = vmatprep.subr.bf16.mxu1 %v4680_v9 }
 0x1e3   : > { %1141 = vmatpush1.bf16.msra.mxu0 %v4135_v13  ;;  %v4683_v13 = vld [vmem:[#allocation5 + $0x6c] ss:$16 sps:$4 sm:$0xff]  }
 0x1e4   : > { %1142 = vmatprep.subr.bf16.mxu0 %v4144_v14  ;;  %v4678_v14 = vld [vmem:[#allocation5 + $0x60] ss:$16 sps:$4 sm:$0xff]  }
 0x1e5   : > { %3014 = vmatpush1.bf16.msra.mxu1 %v4678_v14 }
 0x1e6   : > { %3015 = vmatprep.subr.bf16.mxu1 %v4686_v16 }
 0x1e7   : > { %1143 = vmatpush1.bf16.msra.mxu0 %v4143_v17  ;;  %v4689_v17 = vld [vmem:[#allocation5 + $0x8c] ss:$16 sps:$4 sm:$0xff]  }
 0x1e8   : > { %1144 = vmatprep.subr.bf16.mxu0 %v4152_v18  ;;  %v4684_v18 = vld [vmem:[#allocation5 + $0x80] ss:$16 sps:$4 sm:$0xff]  }
 0x1e9   : > { %3016 = vmatpush1.bf16.msra.mxu1 %v4684_v18 }
 0x1ea   : > { %3017 = vmatprep.subr.bf16.mxu1 %v4692_v20 }
 0x1eb   : > { %1145 = vmatpush1.bf16.msra.mxu0 %v4151_v21  ;;  %v4695_v21 = vld [vmem:[#allocation5 + $0xac] ss:$16 sps:$4 sm:$0xff]  }
 0x1ec   : > { %1146 = vmatprep.subr.bf16.mxu0 %v4160_v22  ;;  %v4690_v22 = vld [vmem:[#allocation5 + $0xa0] ss:$16 sps:$4 sm:$0xff]  }
 0x1ed   : > { %3018 = vmatpush1.bf16.msra.mxu1 %v4690_v22 }
 0x1ee   : > { %3019 = vmatprep.subr.bf16.mxu1 %v4698_v24 }
 0x1ef   : > { %1147 = vmatpush1.bf16.msra.mxu0 %v4159_v10  ;;  %v4701_v10 = vld [vmem:[#allocation5 + $0xcc] ss:$16 sps:$4 sm:$0xff]  }
 0x1f0   : > { %1148 = vmatprep.subr.bf16.mxu0 %v4168_v11  ;;  %v4696_v11 = vld [vmem:[#allocation5 + $0xc0] ss:$16 sps:$4 sm:$0xff]  }
 0x1f1   : > { %3020 = vmatpush1.bf16.msra.mxu1 %v4696_v11 }
 0x1f2   : > { %3021 = vmatprep.subr.bf16.mxu1 %v4704_v25 }
 0x1f3   : > { %1149 = vmatpush1.bf16.msra.mxu0 %v4167_v26  ;;  %v4707_v26 = vld [vmem:[#allocation5 + $0xec] ss:$16 sps:$4 sm:$0xff]  }
 0x1f4   : > { %1220 = vmatprep.subr.bf16.mxu0 %v4116_v27  ;;  %v4702_v27 = vld [vmem:[#allocation5 + $0xe0] ss:$16 sps:$4 sm:$0xff]  }
 0x1f5   : > { %3022 = vmatpush1.bf16.msra.mxu1 %v4702_v27 }
 0x1f6   : > { %1167 = vmatmul.mubr.bf16.vlgmr.msra.gmra.mrb[8].mxu0 %v5534_v61  ;;  %3023 = vmatprep.subr.bf16.mxu1 %v4710_v29 }
 0x1f7   : > { %1221 = vmatpush1.bf16.msra.mxu0 %v4115_v30  ;;  %1252 = vmatprep.mubr.bf16.mxu0 %v5282_v1  ;;  %v4156_v1 = vcombine.high %v708_v48, %v712_v49  ;;  %v4713_v30 = vld [vmem:[#allocation5 + $0x10c] ss:$16 sps:$4 sm:$0xff]   ;;  %v4729_v48 = vld [vmem:[#allocation5 + $0x168] ss:$16 sps:$4 sm:$0xff]   ;;  %v4734_v49 = vld [vmem:[#allocation5 + $0x184] ss:$16 sps:$4 sm:$0xff]  }
 0x1f8   : > { %1222 = vmatprep.subr.bf16.mxu0 %v4124_v31  ;;  %v4708_v31 = vld [vmem:[#allocation5 + $0x100] ss:$16 sps:$4 sm:$0xff]  }
 0x1f9   : > { %3024 = vmatpush1.bf16.msra.mxu1 %v4708_v31 }
 0x1fa   : > { %3025 = vmatprep.subr.bf16.mxu1 %v4716_v33 }
 0x1fb   : > { %1223 = vmatpush1.bf16.msra.mxu0 %v4123_v34  ;;  %v4719_v34 = vld [vmem:[#allocation5 + $0x12c] ss:$16 sps:$4 sm:$0xff]  }
 0x1fc   : > { %1224 = vmatprep.subr.bf16.mxu0 %v4132_v35  ;;  %v4714_v35 = vld [vmem:[#allocation5 + $0x120] ss:$16 sps:$4 sm:$0xff]  }
 0x1fd   : > { %3026 = vmatpush1.bf16.msra.mxu1 %v4714_v35 }
 0x1fe   : > { %3027 = vmatprep.subr.bf16.mxu1 %v4722_v37 }
 0x1ff   : > { %1225 = vmatpush1.bf16.msra.mxu0 %v4131_v38  ;;  %v4725_v38 = vld [vmem:[#allocation5 + $0x14c] ss:$16 sps:$4 sm:$0xff]  }
 0x200   : > { %1226 = vmatprep.subr.bf16.mxu0 %v4140_v43  ;;  %v4720_v43 = vld [vmem:[#allocation5 + $0x140] ss:$16 sps:$4 sm:$0xff]  }
 0x201   : > { %3028 = vmatpush1.bf16.msra.mxu1 %v4720_v43 }
 0x202   : > { %3029 = vmatprep.subr.bf16.mxu1 %v4728_v45 }
 0x203   : > { %1227 = vmatpush1.bf16.msra.mxu0 %v4139_v46  ;;  %v4731_v46 = vld [vmem:[#allocation5 + $0x16c] ss:$16 sps:$4 sm:$0xff]  }
 0x204   : > { %1228 = vmatprep.subr.bf16.mxu0 %v4148_v47  ;;  %v4726_v47 = vld [vmem:[#allocation5 + $0x160] ss:$16 sps:$4 sm:$0xff]  }
 0x205   : > { %3030 = vmatpush1.bf16.msra.mxu1 %v4726_v47 }
 0x206   : > { %3031 = vmatprep.subr.bf16.mxu1 %v4734_v49 }
 0x207   : > { %1229 = vmatpush1.bf16.msra.mxu0 %v4147_v50  ;;  %v4737_v50 = vld [vmem:[#allocation5 + $0x18c] ss:$16 sps:$4 sm:$0xff]  }
 0x208   : > { %1230 = vmatprep.subr.bf16.mxu0 %v4156_v1  ;;  %v4732_v1 = vld [vmem:[#allocation5 + $0x180] ss:$16 sps:$4 sm:$0xff]  }
 0x209   : > { %3032 = vmatpush1.bf16.msra.mxu1 %v4732_v1 }
 0x20a   : > { %3033 = vmatprep.subr.bf16.mxu1 %v4740_v52 }
 0x20b   : > { %1231 = vmatpush1.bf16.msra.mxu0 %v4155_v53  ;;  %v4743_v53 = vld [vmem:[#allocation5 + $0x1ac] ss:$16 sps:$4 sm:$0xff]  }
 0x20c   : > { %1232 = vmatprep.subr.bf16.mxu0 %v4164_v54  ;;  %v4738_v54 = vld [vmem:[#allocation5 + $0x1a0] ss:$16 sps:$4 sm:$0xff]  }
 0x20d   : > { %3034 = vmatpush1.bf16.msra.mxu1 %v4738_v54 }
 0x20e   : > { %3035 = vmatprep.subr.bf16.mxu1 %v4746_v56 }
 0x20f   : > { %1233 = vmatpush1.bf16.msra.mxu0 %v4163_v57  ;;  %v4749_v57 = vld [vmem:[#allocation5 + $0x1cc] ss:$16 sps:$4 sm:$0xff]  }
 0x210   : > { %1234 = vmatprep.subr.bf16.mxu0 %v4172_v58  ;;  %v4744_v58 = vld [vmem:[#allocation5 + $0x1c0] ss:$16 sps:$4 sm:$0xff]  }
 0x211   : > { %3036 = vmatpush1.bf16.msra.mxu1 %v4744_v58 }
 0x213   : > { %1235 = vmatpush1.bf16.msra.mxu0 %v4171_v59  ;;  %v4747_v59 = vld [vmem:[#allocation5 + $0x1c8] ss:$16 sps:$4 sm:$0xff]  }
 0x214   : > { %3171 = vmatprep.subr.bf16.mxu0 %v4665_v62  ;;  %v4752_v62 = vld [vmem:[#allocation5 + $0x1e4] ss:$16 sps:$4 sm:$0xff]  }
 0x215   : > { %3037 = vmatprep.subr.bf16.mxu1 %v4752_v62 }
 0x216   : > { %1253 = vmatmul.mubr.bf16.vlgmr.msra.gmra.mrb[12].mxu0 %v5534_v61  ;;  %v4675_v61 = vld [vmem:[#allocation5 + $0x48] ss:$16 sps:$4 sm:$0xff]   ;;  %3038 = vmatpush1.bf16.msra.mxu1 %v4750_v60 }
 0x217   : > { %3172 = vmatpush1.bf16.msra.mxu0 %v4663_v0  ;;  %v4755_v0 = vld [vmem:[#allocation5 + $0x1ec] ss:$16 sps:$4 sm:$0xff]   ;;  %3048 = vmatprep.subr.bf16.mxu1 %v4758_v2 }
 0x218   : > { %3173 = vmatprep.subr.bf16.mxu0 %v4671_v3  ;;  %v4761_v3 = vld [vmem:[#allocation5 + $0x20c] ss:$16 sps:$4 sm:$0xff]  }
 0x21b   : > { %3174 = vmatpush1.bf16.msra.mxu0 %v4669_v5  ;;  %v5546_v5 = vld [vmem:[%s5697_s6] sm:$0xff] }
 0x21c   : > { %3175 = vmatprep.subr.bf16.mxu0 %v4677_v7  ;;  %v734_v7 = vrot.slane %v5546_v5, %v5513_v41  ;;  %v750_v8 = vrot.slane %v5546_v5, %v749_v4  ;;  %v754_v9 = vrot.slane %v5546_v5, %v753_v6 }
 0x21f   : > { %3176 = vmatpush1.bf16.msra.mxu0 %v4675_v61  ;;  %v738_v61 = vrot.slane %v5546_v5, %v5510_v40 }
 0x220   : > { %3177 = vmatprep.subr.bf16.mxu0 %v4683_v13 }
 0x223   : > { %3178 = vmatpush1.bf16.msra.mxu0 %v4681_v15 }
 0x224   : > { %3179 = vmatprep.subr.bf16.mxu0 %v4689_v17 }
 0x227   : > { %3180 = vmatpush1.bf16.msra.mxu0 %v4687_v19 }
 0x228   : > { %3181 = vmatprep.subr.bf16.mxu0 %v4695_v21 }
 0x22b   : > { %3182 = vmatpush1.bf16.msra.mxu0 %v4693_v23 }
 0x22c   : > { %3183 = vmatprep.subr.bf16.mxu0 %v4701_v10 }
 0x22f   : > { %3184 = vmatpush1.bf16.msra.mxu0 %v4699_v12 }
 0x230   : > { %3185 = vmatprep.subr.bf16.mxu0 %v4707_v26 }
 0x233   : > { %3186 = vmatpush1.bf16.msra.mxu0 %v4705_v28 }
 0x234   : > { %3187 = vmatprep.subr.bf16.mxu0 %v4713_v30 }
 0x237   : > { %3188 = vmatpush1.bf16.msra.mxu0 %v4711_v32 }
 0x238   : > { %3189 = vmatprep.subr.bf16.mxu0 %v4719_v34 }
 0x23b   : > { %3190 = vmatpush1.bf16.msra.mxu0 %v4717_v36 }
 0x23c   : > { %3191 = vmatprep.subr.bf16.mxu0 %v4725_v38 }
 0x23f   : > { %3192 = vmatpush1.bf16.msra.mxu0 %v4723_v44 }
 0x240   : > { %3193 = vmatprep.subr.bf16.mxu0 %v4731_v46 }
 0x243   : > { %3194 = vmatpush1.bf16.msra.mxu0 %v4729_v48 }
 0x244   : > { %3195 = vmatprep.subr.bf16.mxu0 %v4737_v50 }
 0x247   : > { %3196 = vmatpush1.bf16.msra.mxu0 %v4735_v51 }
 0x248   : > { %3197 = vmatprep.subr.bf16.mxu0 %v4743_v53 }
 0x24b   : > { %3198 = vmatpush1.bf16.msra.mxu0 %v4741_v55 }
 0x24c   : > { %3199 = vmatprep.subr.bf16.mxu0 %v4749_v57 }
 0x24f   : > { %3200 = vmatpush1.bf16.msra.mxu0 %v4747_v59 }
 0x250   : > { %3201 = vmatprep.subr.bf16.mxu0 %v4755_v0 }
 0x253   : > { %3202 = vmatpush1.bf16.msra.mxu0 %v4753_v63 }
 0x254   : > { %3212 = vmatprep.subr.bf16.mxu0 %v4761_v3 }
 0x2a9   : > { %v1125_v13 = vpop.f32.mrb[4].mxu0  ;;  %v1211_v14 = vpop.f32.mrb[0].mxu1 }
 0x2aa   : > { %v1126_v15 = vadd.f32 %v1125_v13, %v734_v7  ;;  %v1212_v16 = vadd.f32 %v1211_v14, %v750_v8  ;;  %v1127_v17 = vpop.f32.mrb[5].mxu0  ;;  %v1213_v18 = vpop.f32.mrb[1].mxu1 }
 0x2ab   : > { %v1128_v19 = vadd.f32 %v1127_v17, %v738_v61  ;;  %v1214_v20 = vadd.f32 %v1213_v18, %v754_v9  ;;  %v1129_v21 = vpop.f32.mrb[6].mxu0  ;;  %v1215_v22 = vpop.f32.mrb[2].mxu1 }
 0x2ac   : > { %v1130_v23 = vadd.f32 %v1129_v21, %v734_v7  ;;  %v1216_v24 = vadd.f32 %v1215_v22, %v750_v8  ;;  %v1131_v10 = vpop.f32.mrb[7].mxu0  ;;  %v1217_v11 = vpop.f32.mrb[3].mxu1  ;;  %v1263_v26 = vmax.f32 %v1126_v15, 0.0  ;;  %v1267_v27 = vmax.f32 %v1212_v16, 0.0 }
 0x2ad   : > { %v1132_v12 = vadd.f32 %v1131_v10, %v738_v61  ;;  %v1218_v25 = vadd.f32 %v1217_v11, %v754_v9  ;;  %v1264_v30 = vmax.f32 %v1128_v19, 0.0  ;;  %v1268_v31 = vmax.f32 %v1214_v20, 0.0 }
 0x2ae   : > { %v1271_v28 = vmax.f32 %v1130_v23, 0.0  ;;  %v1275_v29 = vmax.f32 %v1216_v24, 0.0  ;;  %v5566_v8 = vsub.s32 3, %v5507_v39  ;;  %v742_v61 = vrot.slane %v5546_v5, %v5516_v42 }
 0x2af   : > { %v1272_v32 = vmax.f32 %v1132_v12, 0.0  ;;  %v1276_v33 = vmax.f32 %v1218_v25, 0.0 }
 0x2b0   : > { %v1280_v34 = vmax.f32 %v1263_v26, %v1271_v28  ;;  %v1308_v35 = vmax.f32 %v1267_v27, %v1275_v29  ;;  %v746_v9 = vrot.slane %v5546_v5, %v5566_v8  ;;  %v5286_v27 = vmov 1966171168  }
 0x2b1   : > { %v1287_v36 = vmax.f32 %v1264_v30, %v1272_v32  ;;  %v1315_v37 = vmax.f32 %v1268_v31, %v1276_v33  ;;  %v1349_v28 = vunpack.c.l.s4 %v5286_v27 }
 0x2b2   : > { %v1281_v38 = vrot.slane %v1280_v34, 4  ;;  %v1309_v43 = vrot.slane %v1308_v35, 4 }
 0x2b3   : > { %v1288_v44 = vrot.slane %v1287_v36, 4  ;;  %v1316_v45 = vrot.slane %v1315_v37, 4  ;;  %v1350_v33 = vunpack.c.0.s8 %v1349_v28 }
 0x2b4   : > { %v1282_v46 = vmax.f32 %v1280_v34, %v1281_v38  ;;  %v1310_v47 = vmax.f32 %v1308_v35, %v1309_v43 }
 0x2b5   : > { %v1289_v48 = vmax.f32 %v1287_v36, %v1288_v44  ;;  %v1317_v49 = vmax.f32 %v1315_v37, %v1316_v45  ;;  %v1353_v38 = vsub.s32 %v1350_v33, %v5507_v39 }
 0x2b6   : > { %v1283_v50 = vrot.slane %v1282_v46, 2  ;;  %v1311_v1 = vrot.slane %v1310_v47, 2 }
 0x2b7   : > { %v1290_v51 = vrot.slane %v1289_v48, 2  ;;  %v1318_v52 = vrot.slane %v1317_v49, 2 }
 0x2b8   : > { %v1284_v53 = vmax.f32 %v1282_v46, %v1283_v50  ;;  %v1312_v54 = vmax.f32 %v1310_v47, %v1311_v1  ;;  %v757_v47 = vsub.s32 6, %v5507_v39 }
 0x2b9   : > { %v1291_v55 = vmax.f32 %v1289_v48, %v1290_v51  ;;  %v1319_v56 = vmax.f32 %v1317_v49, %v1318_v52  ;;  %v761_v49 = vsub.s32 7, %v5507_v39  ;;  %v5055_v39 = vld [vmem:[#allocation7 + $0x34] ss:$8 sps:$4 sm:$0xff]  }
 0x2ba   : > { %v1285_v57 = vrot.slane %v1284_v53, 1  ;;  %v1313_v58 = vrot.slane %v1312_v54, 1  ;;  %v758_v50 = vrot.slane %v5546_v5, %v757_v47 }
 0x2bb   : > { %v1292_v59 = vrot.slane %v1291_v55, 1  ;;  %v1320_v60 = vrot.slane %v1319_v56, 1  ;;  %v762_v1 = vrot.slane %v5546_v5, %v761_v49 }
 0x2bc   : > { %v1286_v62 = vmax.f32 %v1284_v53, %v1285_v57  ;;  %v5559_v63 = vmax.f32 %v1312_v54, %v1313_v58 }
 0x2bd   : > { %v1293_v0 = vmax.f32 %v1291_v55, %v1292_v59  ;;  %v5561_v2 = vmax.f32 %v1319_v56, %v1320_v60 }
 0x2bf   : > { %v1344_v3 = vcombine.low %v1286_v62, %v1293_v0  ;;  %v1346_v7 = vcombine.low %v5559_v63, %v5561_v2  ;;  %v4764_v2 = vld [vmem:[#allocation5 + $0x224] ss:$16 sps:$4 sm:$0xff]  }
 0x2c1   : > { %v1354_v45 = vrot.slane %v1344_v3, %v1353_v38 }
 0x2c9   : > { %v1168_v13 = vpop.f32.mrb[8].mxu0 }
 0x2ca   : > { %v1169_v14 = vadd.f32 %v1168_v13, %v742_v61  ;;  %v1170_v15 = vpop.f32.mrb[9].mxu0 }
 0x2cb   : > { %v1171_v16 = vadd.f32 %v1170_v15, %v746_v9  ;;  %v1172_v17 = vpop.f32.mrb[10].mxu0 }
 0x2cc   : > { %v1173_v18 = vadd.f32 %v1172_v17, %v742_v61  ;;  %v1174_v19 = vpop.f32.mrb[11].mxu0  ;;  %v1265_v21 = vmax.f32 %v1169_v14, 0.0 }
 0x2cd   : > { %v1175_v20 = vadd.f32 %v1174_v19, %v746_v9  ;;  %v1266_v23 = vmax.f32 %v1171_v16, 0.0 }
 0x2ce   : > { %v1273_v22 = vmax.f32 %v1173_v18, 0.0 }
 0x2cf   : > { %v1274_v24 = vmax.f32 %v1175_v20, 0.0 }
 0x2d0   : > { %v1294_v10 = vmax.f32 %v1265_v21, %v1273_v22 }
 0x2d1   : > { %v1301_v11 = vmax.f32 %v1266_v23, %v1274_v24  ;;  %v1368_v24 = vrot.slane %v1346_v7, %v1353_v38  ;;  %v4767_v7 = vld [vmem:[#allocation5 + $0x22c] ss:$16 sps:$4 sm:$0xff]  }
 0x2d2   : > { %v1295_v12 = vrot.slane %v1294_v10, 4 }
 0x2d3   : > { %v1302_v25 = vrot.slane %v1301_v11, 4 }
 0x2d4   : > { %v1296_v26 = vmax.f32 %v1294_v10, %v1295_v12 }
 0x2d5   : > { %v1303_v29 = vmax.f32 %v1301_v11, %v1302_v25 }
 0x2d6   : > { %v1297_v30 = vrot.slane %v1296_v26, 2 }
 0x2d7   : > { %v1304_v31 = vrot.slane %v1303_v29, 2 }
 0x2d8   : > { %v1298_v32 = vmax.f32 %v1296_v26, %v1297_v30 }
 0x2d9   : > { %v1305_v34 = vmax.f32 %v1303_v29, %v1304_v31  ;;  %v4756_v31 = vld [vmem:[#allocation5 + $0x200] ss:$16 sps:$4 sm:$0xff]  }
 0x2da   : > { %v1299_v35 = vrot.slane %v1298_v32, 1 }
 0x2db   : > { %v1306_v36 = vrot.slane %v1305_v34, 1 }
 0x2dc   : > { %v1300_v37 = vmax.f32 %v1298_v32, %v1299_v35  ;;  %v4759_v32 = vld [vmem:[#allocation5 + $0x208] ss:$16 sps:$4 sm:$0xff]  }
 0x2dd   : > { %v1307_v43 = vmax.f32 %v1305_v34, %v1306_v36  ;;  %v4762_v34 = vld [vmem:[#allocation5 + $0x220] ss:$16 sps:$4 sm:$0xff]   ;;  %v4765_v35 = vld [vmem:[#allocation5 + $0x228] ss:$16 sps:$4 sm:$0xff]   ;;  %v4770_v36 = vld [vmem:[#allocation5 + $0x244] ss:$16 sps:$4 sm:$0xff]  }
 0x2df   : > { %v1345_v44 = vcombine.low %v1300_v37, %v1307_v43  ;;  %v4773_v37 = vld [vmem:[#allocation5 + $0x24c] ss:$16 sps:$4 sm:$0xff]   ;;  %v4771_v43 = vld [vmem:[#allocation5 + $0x248] ss:$16 sps:$4 sm:$0xff]  }
 0x2e1   : > { %v1361_v46 = vrot.slane %v1345_v44, %v1353_v38  ;;  %v4776_v44 = vld [vmem:[#allocation5 + $0x264] ss:$16 sps:$4 sm:$0xff]  }
 0x2e3   : > { %v1376_v48 = vcombine.low %v1354_v45, %v1361_v46  ;;  %v4779_v45 = vld [vmem:[#allocation5 + $0x26c] ss:$16 sps:$4 sm:$0xff]   ;;  %v4774_v46 = vld [vmem:[#allocation5 + $0x260] ss:$16 sps:$4 sm:$0xff]  }
 0x2e5   : > { %v1384_v12 = vrot.slane %v1376_v48, %v1353_v38  ;;  %v4777_v48 = vld [vmem:[#allocation5 + $0x268] ss:$16 sps:$4 sm:$0xff]  }
 0x2e9   : > { %v1254_v51 = vpop.f32.mrb[12].mxu0 }
 0x2ea   : > { %v1255_v52 = vadd.f32 %v1254_v51, %v758_v50  ;;  %v1256_v53 = vpop.f32.mrb[13].mxu0  ;;  %v4780_v51 = vld [vmem:[#allocation5 + $0x280] ss:$16 sps:$4 sm:$0xff]  }
 0x2eb   : > { %v1257_v54 = vadd.f32 %v1256_v53, %v762_v1  ;;  %v1258_v55 = vpop.f32.mrb[14].mxu0  ;;  %v4788_v53 = vld [vmem:[#allocation5 + $0x2a4] ss:$16 sps:$4 sm:$0xff]  }
 0x2ec   : > { %v1259_v56 = vadd.f32 %v1258_v55, %v758_v50  ;;  %v1260_v57 = vpop.f32.mrb[15].mxu0  ;;  %v1269_v59 = vmax.f32 %v1255_v52, 0.0  ;;  %v4782_v50 = vld [vmem:[#allocation5 + $0x284] ss:$16 sps:$4 sm:$0xff]   ;;  %v4783_v52 = vld [vmem:[#allocation5 + $0x288] ss:$16 sps:$4 sm:$0xff]  }
 0x2ed   : > { %v1261_v58 = vadd.f32 %v1260_v57, %v762_v1  ;;  %v1270_v62 = vmax.f32 %v1257_v54, 0.0  ;;  %v4785_v1 = vld [vmem:[#allocation5 + $0x28c] ss:$16 sps:$4 sm:$0xff]   ;;  %v4786_v55 = vld [vmem:[#allocation5 + $0x2a0] ss:$16 sps:$4 sm:$0xff]  }
 0x2ee   : > { %v1277_v60 = vmax.f32 %v1259_v56, 0.0  ;;  %v4791_v54 = vld [vmem:[#allocation5 + $0x2ac] ss:$16 sps:$4 sm:$0xff]   ;;  %v4789_v56 = vld [vmem:[#allocation5 + $0x2a8] ss:$16 sps:$4 sm:$0xff]  }
 0x2ef   : > { %v1278_v0 = vmax.f32 %v1261_v58, 0.0  ;;  %v4794_v57 = vld [vmem:[#allocation5 + $0x2c4] ss:$16 sps:$4 sm:$0xff]   ;;  %v4797_v58 = vld [vmem:[#allocation5 + $0x2cc] ss:$16 sps:$4 sm:$0xff]  }
 0x2f0   : > { %v1322_v3 = vmax.f32 %v1269_v59, %v1277_v60  ;;  %v4792_v59 = vld [vmem:[#allocation5 + $0x2c0] ss:$16 sps:$4 sm:$0xff]   ;;  %v4795_v60 = vld [vmem:[#allocation5 + $0x2c8] ss:$16 sps:$4 sm:$0xff]  }
 0x2f1   : > { %v1329_v61 = vmax.f32 %v1270_v62, %v1278_v0  ;;  %v4800_v62 = vld [vmem:[#allocation5 + $0x2e4] ss:$16 sps:$4 sm:$0xff]   ;;  %v4803_v0 = vld [vmem:[#allocation5 + $0x2ec] ss:$16 sps:$4 sm:$0xff]  }
 0x2f2   : > { %v1323_v9 = vrot.slane %v1322_v3, 4 }
 0x2f3   : > { %v1330_v13 = vrot.slane %v1329_v61, 4 }
 0x2f4   : > { %v1324_v14 = vmax.f32 %v1322_v3, %v1323_v9  ;;  %v4798_v3 = vld [vmem:[#allocation5 + $0x2e0] ss:$16 sps:$4 sm:$0xff]   ;;  %v4806_v9 = vld [vmem:[#allocation5 + $0x304] ss:$16 sps:$4 sm:$0xff]  }
 0x2f5   : > { %v1331_v15 = vmax.f32 %v1329_v61, %v1330_v13  ;;  %v4801_v61 = vld [vmem:[#allocation5 + $0x2e8] ss:$16 sps:$4 sm:$0xff]   ;;  %v4809_v13 = vld [vmem:[#allocation5 + $0x30c] ss:$16 sps:$4 sm:$0xff]  }
 0x2f6   : > { %v1325_v16 = vrot.slane %v1324_v14, 2 }
 0x2f7   : > { %v1332_v5 = vrot.slane %v1331_v15, 2 }
 0x2f8   : > { %v1326_v17 = vmax.f32 %v1324_v14, %v1325_v16  ;;  %v4804_v14 = vld [vmem:[#allocation5 + $0x300] ss:$16 sps:$4 sm:$0xff]   ;;  %v4812_v16 = vld [vmem:[#allocation5 + $0x324] ss:$16 sps:$4 sm:$0xff]  }
 0x2f9   : > { %v1333_v18 = vmax.f32 %v1331_v15, %v1332_v5  ;;  %v4807_v15 = vld [vmem:[#allocation5 + $0x308] ss:$16 sps:$4 sm:$0xff]   ;;  %v4815_v5 = vld [vmem:[#allocation5 + $0x32c] ss:$16 sps:$4 sm:$0xff]  }
 0x2fa   : > { %v1327_v19 = vrot.slane %v1326_v17, 1 }
 0x2fb   : > { %v1334_v20 = vrot.slane %v1333_v18, 1 }
 0x2fc   : > { %v1328_v21 = vmax.f32 %v1326_v17, %v1327_v19  ;;  %v4810_v17 = vld [vmem:[#allocation5 + $0x320] ss:$16 sps:$4 sm:$0xff]   ;;  %v4818_v19 = vld [vmem:[#allocation5 + $0x344] ss:$16 sps:$4 sm:$0xff]  }
 0x2fd   : > { %v1335_v22 = vmax.f32 %v1333_v18, %v1334_v20  ;;  %v4813_v18 = vld [vmem:[#allocation5 + $0x328] ss:$16 sps:$4 sm:$0xff]   ;;  %v4821_v20 = vld [vmem:[#allocation5 + $0x34c] ss:$16 sps:$4 sm:$0xff]  }
 0x2ff   : > { %v1347_v23 = vcombine.low %v1328_v21, %v1335_v22  ;;  %v4816_v21 = vld [vmem:[#allocation5 + $0x340] ss:$16 sps:$4 sm:$0xff]   ;;  %v4819_v22 = vld [vmem:[#allocation5 + $0x348] ss:$16 sps:$4 sm:$0xff]  }
 0x301   : > { %v1375_v10 = vrot.slane %v1347_v23, %v1353_v38  ;;  %v4824_v23 = vld [vmem:[#allocation5 + $0x364] ss:$16 sps:$4 sm:$0xff]  }
 0x303   : > { %v1377_v11 = vcombine.low %v1368_v24, %v1375_v10  ;;  %v4827_v24 = vld [vmem:[#allocation5 + $0x36c] ss:$16 sps:$4 sm:$0xff]   ;;  %v4822_v10 = vld [vmem:[#allocation5 + $0x360] ss:$16 sps:$4 sm:$0xff]  }
 0x305   : > { %v1391_v25 = vrot.slane %v1377_v11, %v1353_v38  ;;  %v4768_v38 = vld [vmem:[#allocation5 + $0x240] ss:$16 sps:$4 sm:$0xff]   ;;  %v4825_v11 = vld [vmem:[#allocation5 + $0x368] ss:$16 sps:$4 sm:$0xff]  }
 0x307   : > { %v5584_v26 = vcombine.low %v1384_v12, %v1391_v25  ;;  %v4830_v12 = vld [vmem:[#allocation5 + $0x384] ss:$16 sps:$4 sm:$0xff]   ;;  %v4833_v25 = vld [vmem:[#allocation5 + $0x38c] ss:$16 sps:$4 sm:$0xff]  }
 0x309   : > { %v1408_v27 = vrot.slane %v5584_v26, %v5510_v40  ;;  %v1404_v28 = vrot.slane %v5584_v26, %v5513_v41  ;;  %v1416_v29 = vrot.slane %v5584_v26, %v5566_v8 }
 0x30b   : > { %v1442_v30 = vpack.c.bf16 %v1408_v27, %v1408_v27  ;;  %v1441_v63 = vpack.c.bf16 %v1404_v28, %v1404_v28  ;;  %v1444_v33 = vpack.c.bf16 %v1416_v29, %v1416_v29  ;;  %v4828_v27 = vld [vmem:[#allocation5 + $0x380] ss:$16 sps:$4 sm:$0xff]   ;;  %v4831_v28 = vld [vmem:[#allocation5 + $0x388] ss:$16 sps:$4 sm:$0xff]   ;;  %v4836_v29 = vld [vmem:[#allocation5 + $0x3a4] ss:$16 sps:$4 sm:$0xff]  }
 0x30d   : > { %3039 = vmatprep.mubr.bf16.mxu1 %v1442_v30  ;;  %3203 = vmatprep.mubr.bf16.mxu0 %v1442_v30  ;;  %v4839_v30 = vld [vmem:[#allocation5 + $0x3ac] ss:$16 sps:$4 sm:$0xff]  }
 0x30e   : > { %3040 = vmatmul.mubr.bf16.vlgmr.msra.gmra.mrb[4].mxu1 %v1441_v63  ;;  %3204 = vmatmul.mubr.bf16.vlgmr.msra.gmra.mrb[16].mxu0 %v1441_v63  ;;  %v4842_v63 = vld [vmem:[#allocation5 + $0x3c4] ss:$16 sps:$4 sm:$0xff]  }
 0x30f   : > { %3049 = vmatpush1.bf16.msra.mxu1 %v4756_v31  ;;  %3213 = vmatpush1.bf16.msra.mxu0 %v4759_v32  ;;  %v4834_v31 = vld [vmem:[#allocation5 + $0x3a0] ss:$16 sps:$4 sm:$0xff]   ;;  %v4837_v32 = vld [vmem:[#allocation5 + $0x3a8] ss:$16 sps:$4 sm:$0xff]  }
 0x310   : > { %3080 = vmatprep.mubr.bf16.mxu1 %v1444_v33  ;;  %3244 = vmatprep.mubr.bf16.mxu0 %v1444_v33  ;;  %v4843_v33 = vld [vmem:[#allocation5 + $0x3c8] ss:$16 sps:$4 sm:$0xff]  }
 0x311   : > { %3050 = vmatprep.subr.bf16.mxu1 %v4764_v2  ;;  %3214 = vmatprep.subr.bf16.mxu0 %v4767_v7  ;;  %v4845_v2 = vld [vmem:[#allocation5 + $0x3cc] ss:$16 sps:$4 sm:$0xff]   ;;  %v4840_v7 = vld [vmem:[#allocation5 + $0x3c0] ss:$16 sps:$4 sm:$0xff]  }
 0x313   : > { %3051 = vmatpush1.bf16.msra.mxu1 %v4762_v34  ;;  %3215 = vmatpush1.bf16.msra.mxu0 %v4765_v35  ;;  %v4848_v34 = vld [vmem:[#allocation5 + $0x3e4] ss:$16 sps:$4 sm:$0xff]   ;;  %v4851_v35 = vld [vmem:[#allocation5 + $0x3ec] ss:$16 sps:$4 sm:$0xff]  }
 0x314   : > { %3052 = vmatprep.subr.bf16.mxu1 %v4770_v36  ;;  %3216 = vmatprep.subr.bf16.mxu0 %v4773_v37  ;;  %v4846_v36 = vld [vmem:[#allocation5 + $0x3e0] ss:$16 sps:$4 sm:$0xff]   ;;  %v4849_v37 = vld [vmem:[#allocation5 + $0x3e8] ss:$16 sps:$4 sm:$0xff]  }
 0x317   : > { %3053 = vmatpush1.bf16.msra.mxu1 %v4768_v38  ;;  %3217 = vmatpush1.bf16.msra.mxu0 %v4771_v43  ;;  %v1412_v38 = vrot.slane %v5584_v26, %v5516_v42  ;;  %v4854_v43 = vld [vmem:[#allocation5 + $0x404] ss:$16 sps:$4 sm:$0xff]  }
 0x318   : > { %3054 = vmatprep.subr.bf16.mxu1 %v4776_v44  ;;  %3218 = vmatprep.subr.bf16.mxu0 %v4779_v45  ;;  %v4857_v44 = vld [vmem:[#allocation5 + $0x40c] ss:$16 sps:$4 sm:$0xff]   ;;  %v1424_v45 = vrot.slane %v5584_v26, %v753_v6 }
 0x319   : > { %v4869_v6 = vld [vmem:[#allocation5 + $0x44c] ss:$16 sps:$4 sm:$0xff]  }
 0x31b   : > { %3055 = vmatpush1.bf16.msra.mxu1 %v4774_v46  ;;  %3219 = vmatpush1.bf16.msra.mxu0 %v4777_v48  ;;  %v4852_v46 = vld [vmem:[#allocation5 + $0x400] ss:$16 sps:$4 sm:$0xff]   ;;  %v1443_v48 = vpack.c.bf16 %v1412_v38, %v1412_v38  ;;  %v4927_v38 = vld [vmem:[#allocation5 + $0x588] ss:$16 sps:$4 sm:$0xff]  }
 0x31c   : > { %3056 = vmatprep.subr.bf16.mxu1 %v4782_v50  ;;  %3220 = vmatprep.subr.bf16.mxu0 %v4785_v1  ;;  %v4855_v50 = vld [vmem:[#allocation5 + $0x408] ss:$16 sps:$4 sm:$0xff]   ;;  %v1446_v1 = vpack.c.bf16 %v1424_v45, %v1424_v45  ;;  %v4930_v45 = vld [vmem:[#allocation5 + $0x5a0] ss:$16 sps:$4 sm:$0xff]  }
 0x31f   : > { %3057 = vmatpush1.bf16.msra.mxu1 %v4780_v51  ;;  %3221 = vmatpush1.bf16.msra.mxu0 %v4783_v52  ;;  %v4860_v51 = vld [vmem:[#allocation5 + $0x424] ss:$16 sps:$4 sm:$0xff]   ;;  %v4863_v52 = vld [vmem:[#allocation5 + $0x42c] ss:$16 sps:$4 sm:$0xff]  }
 0x320   : > { %3058 = vmatprep.subr.bf16.mxu1 %v4788_v53  ;;  %3222 = vmatprep.subr.bf16.mxu0 %v4791_v54  ;;  %v4858_v53 = vld [vmem:[#allocation5 + $0x420] ss:$16 sps:$4 sm:$0xff]   ;;  %v4861_v54 = vld [vmem:[#allocation5 + $0x428] ss:$16 sps:$4 sm:$0xff]  }
 0x323   : > { %3059 = vmatpush1.bf16.msra.mxu1 %v4786_v55  ;;  %3223 = vmatpush1.bf16.msra.mxu0 %v4789_v56  ;;  %v4866_v55 = vld [vmem:[#allocation5 + $0x444] ss:$16 sps:$4 sm:$0xff]   ;;  %v4864_v56 = vld [vmem:[#allocation5 + $0x440] ss:$16 sps:$4 sm:$0xff]  }
 0x324   : > { %3060 = vmatprep.subr.bf16.mxu1 %v4794_v57  ;;  %3224 = vmatprep.subr.bf16.mxu0 %v4797_v58  ;;  %v4867_v57 = vld [vmem:[#allocation5 + $0x448] ss:$16 sps:$4 sm:$0xff]   ;;  %v4872_v58 = vld [vmem:[#allocation5 + $0x464] ss:$16 sps:$4 sm:$0xff]  }
 0x327   : > { %3061 = vmatpush1.bf16.msra.mxu1 %v4792_v59  ;;  %3225 = vmatpush1.bf16.msra.mxu0 %v4795_v60  ;;  %v4875_v59 = vld [vmem:[#allocation5 + $0x46c] ss:$16 sps:$4 sm:$0xff]   ;;  %v4870_v60 = vld [vmem:[#allocation5 + $0x460] ss:$16 sps:$4 sm:$0xff]  }
 0x328   : > { %3062 = vmatprep.subr.bf16.mxu1 %v4800_v62  ;;  %3226 = vmatprep.subr.bf16.mxu0 %v4803_v0  ;;  %v4873_v62 = vld [vmem:[#allocation5 + $0x468] ss:$16 sps:$4 sm:$0xff]   ;;  %v4878_v0 = vld [vmem:[#allocation5 + $0x484] ss:$16 sps:$4 sm:$0xff]  }
 0x32b   : > { %3063 = vmatpush1.bf16.msra.mxu1 %v4798_v3  ;;  %3227 = vmatpush1.bf16.msra.mxu0 %v4801_v61  ;;  %v4881_v3 = vld [vmem:[#allocation5 + $0x48c] ss:$16 sps:$4 sm:$0xff]   ;;  %v4876_v61 = vld [vmem:[#allocation5 + $0x480] ss:$16 sps:$4 sm:$0xff]  }
 0x32c   : > { %3064 = vmatprep.subr.bf16.mxu1 %v4806_v9  ;;  %3228 = vmatprep.subr.bf16.mxu0 %v4809_v13  ;;  %v4879_v9 = vld [vmem:[#allocation5 + $0x488] ss:$16 sps:$4 sm:$0xff]   ;;  %v4884_v13 = vld [vmem:[#allocation5 + $0x4a4] ss:$16 sps:$4 sm:$0xff]  }
 0x32f   : > { %3065 = vmatpush1.bf16.msra.mxu1 %v4804_v14  ;;  %3229 = vmatpush1.bf16.msra.mxu0 %v4807_v15  ;;  %v4887_v14 = vld [vmem:[#allocation5 + $0x4ac] ss:$16 sps:$4 sm:$0xff]   ;;  %v4882_v15 = vld [vmem:[#allocation5 + $0x4a0] ss:$16 sps:$4 sm:$0xff]  }
 0x330   : > { %3066 = vmatprep.subr.bf16.mxu1 %v4812_v16  ;;  %3230 = vmatprep.subr.bf16.mxu0 %v4815_v5  ;;  %v4885_v16 = vld [vmem:[#allocation5 + $0x4a8] ss:$16 sps:$4 sm:$0xff]   ;;  %v4890_v5 = vld [vmem:[#allocation5 + $0x4c4] ss:$16 sps:$4 sm:$0xff]  }
 0x333   : > { %3067 = vmatpush1.bf16.msra.mxu1 %v4810_v17  ;;  %3231 = vmatpush1.bf16.msra.mxu0 %v4813_v18  ;;  %v4893_v17 = vld [vmem:[#allocation5 + $0x4cc] ss:$16 sps:$4 sm:$0xff]   ;;  %v4888_v18 = vld [vmem:[#allocation5 + $0x4c0] ss:$16 sps:$4 sm:$0xff]  }
 0x334   : > { %3068 = vmatprep.subr.bf16.mxu1 %v4818_v19  ;;  %3232 = vmatprep.subr.bf16.mxu0 %v4821_v20  ;;  %v4891_v19 = vld [vmem:[#allocation5 + $0x4c8] ss:$16 sps:$4 sm:$0xff]   ;;  %v4896_v20 = vld [vmem:[#allocation5 + $0x4e4] ss:$16 sps:$4 sm:$0xff]  }
 0x337   : > { %3069 = vmatpush1.bf16.msra.mxu1 %v4816_v21  ;;  %3233 = vmatpush1.bf16.msra.mxu0 %v4819_v22  ;;  %v4899_v21 = vld [vmem:[#allocation5 + $0x4ec] ss:$16 sps:$4 sm:$0xff]   ;;  %v4894_v22 = vld [vmem:[#allocation5 + $0x4e0] ss:$16 sps:$4 sm:$0xff]  }
 0x338   : > { %3070 = vmatprep.subr.bf16.mxu1 %v4824_v23  ;;  %3234 = vmatprep.subr.bf16.mxu0 %v4827_v24  ;;  %v4897_v23 = vld [vmem:[#allocation5 + $0x4e8] ss:$16 sps:$4 sm:$0xff]   ;;  %v4902_v24 = vld [vmem:[#allocation5 + $0x504] ss:$16 sps:$4 sm:$0xff]  }
 0x33b   : > { %3071 = vmatpush1.bf16.msra.mxu1 %v4822_v10  ;;  %3235 = vmatpush1.bf16.msra.mxu0 %v4825_v11  ;;  %v4905_v10 = vld [vmem:[#allocation5 + $0x50c] ss:$16 sps:$4 sm:$0xff]   ;;  %v4900_v11 = vld [vmem:[#allocation5 + $0x500] ss:$16 sps:$4 sm:$0xff]  }
 0x33c   : > { %3072 = vmatprep.subr.bf16.mxu1 %v4830_v12  ;;  %3236 = vmatprep.subr.bf16.mxu0 %v4833_v25  ;;  %v4903_v12 = vld [vmem:[#allocation5 + $0x508] ss:$16 sps:$4 sm:$0xff]   ;;  %v4908_v25 = vld [vmem:[#allocation5 + $0x524] ss:$16 sps:$4 sm:$0xff]  }
 0x33f   : > { %3073 = vmatpush1.bf16.msra.mxu1 %v4828_v27  ;;  %3237 = vmatpush1.bf16.msra.mxu0 %v4831_v28  ;;  %v4911_v27 = vld [vmem:[#allocation5 + $0x52c] ss:$16 sps:$4 sm:$0xff]   ;;  %v4906_v28 = vld [vmem:[#allocation5 + $0x520] ss:$16 sps:$4 sm:$0xff]  }
 0x340   : > { %3074 = vmatprep.subr.bf16.mxu1 %v4836_v29  ;;  %3238 = vmatprep.subr.bf16.mxu0 %v4839_v30  ;;  %v4909_v29 = vld [vmem:[#allocation5 + $0x528] ss:$16 sps:$4 sm:$0xff]   ;;  %v4914_v30 = vld [vmem:[#allocation5 + $0x544] ss:$16 sps:$4 sm:$0xff]  }
 0x343   : > { %3075 = vmatpush1.bf16.msra.mxu1 %v4834_v31  ;;  %3239 = vmatpush1.bf16.msra.mxu0 %v4837_v32  ;;  %v4917_v31 = vld [vmem:[#allocation5 + $0x54c] ss:$16 sps:$4 sm:$0xff]   ;;  %v4912_v32 = vld [vmem:[#allocation5 + $0x540] ss:$16 sps:$4 sm:$0xff]  }
 0x344   : > { %3076 = vmatprep.subr.bf16.mxu1 %v4842_v63  ;;  %3240 = vmatprep.subr.bf16.mxu0 %v4845_v2  ;;  %v4915_v63 = vld [vmem:[#allocation5 + $0x548] ss:$16 sps:$4 sm:$0xff]   ;;  %v4920_v2 = vld [vmem:[#allocation5 + $0x564] ss:$16 sps:$4 sm:$0xff]  }
 0x347   : > { %3077 = vmatpush1.bf16.msra.mxu1 %v4840_v7  ;;  %3241 = vmatpush1.bf16.msra.mxu0 %v4843_v33  ;;  %v4923_v7 = vld [vmem:[#allocation5 + $0x56c] ss:$16 sps:$4 sm:$0xff]   ;;  %v4918_v33 = vld [vmem:[#allocation5 + $0x560] ss:$16 sps:$4 sm:$0xff]  }
 0x348   : > { %3078 = vmatprep.subr.bf16.mxu1 %v4848_v34  ;;  %3242 = vmatprep.subr.bf16.mxu0 %v4851_v35  ;;  %v4921_v34 = vld [vmem:[#allocation5 + $0x568] ss:$16 sps:$4 sm:$0xff]   ;;  %v4926_v35 = vld [vmem:[#allocation5 + $0x584] ss:$16 sps:$4 sm:$0xff]  }
 0x34b   : > { %3079 = vmatpush1.bf16.msra.mxu1 %v4846_v36  ;;  %3243 = vmatpush1.bf16.msra.mxu0 %v4849_v37  ;;  %v4929_v36 = vld [vmem:[#allocation5 + $0x58c] ss:$16 sps:$4 sm:$0xff]   ;;  %v4924_v37 = vld [vmem:[#allocation5 + $0x580] ss:$16 sps:$4 sm:$0xff]  }
 0x34c   : > { %3089 = vmatprep.subr.bf16.mxu1 %v4854_v43  ;;  %3253 = vmatprep.subr.bf16.mxu0 %v4857_v44  ;;  %v4932_v43 = vld [vmem:[#allocation5 + $0x5a4] ss:$16 sps:$4 sm:$0xff]   ;;  %v4935_v44 = vld [vmem:[#allocation5 + $0x5ac] ss:$16 sps:$4 sm:$0xff]  }
 0x34e   : > { %3081 = vmatmul.mubr.bf16.vlgmr.msra.gmra.mrb[4].mxu1 %v1443_v48  ;;  %3245 = vmatmul.mubr.bf16.vlgmr.msra.gmra.mrb[16].mxu0 %v1443_v48  ;;  %v4938_v48 = vld [vmem:[#allocation5 + $0x5c4] ss:$16 sps:$4 sm:$0xff]  }
 0x34f   : > { %3090 = vmatpush1.bf16.msra.mxu1 %v4852_v46  ;;  %3121 = vmatprep.mubr.bf16.mxu1 %v1446_v1  ;;  %v4933_v46 = vld [vmem:[#allocation5 + $0x5a8] ss:$16 sps:$4 sm:$0xff]  }
 0x350   : > { %3254 = vmatpush1.bf16.msra.mxu0 %v4855_v50  ;;  %3285 = vmatprep.mubr.bf16.mxu0 %v1446_v1  ;;  %v4941_v50 = vld [vmem:[#allocation5 + $0x5cc] ss:$16 sps:$4 sm:$0xff]   ;;  %v4936_v1 = vld [vmem:[#allocation5 + $0x5c0] ss:$16 sps:$4 sm:$0xff]  }
 0x351   : > { %3091 = vmatprep.subr.bf16.mxu1 %v4860_v51  ;;  %3255 = vmatprep.subr.bf16.mxu0 %v4863_v52  ;;  %v4939_v51 = vld [vmem:[#allocation5 + $0x5c8] ss:$16 sps:$4 sm:$0xff]   ;;  %v4944_v52 = vld [vmem:[#allocation5 + $0x5e4] ss:$16 sps:$4 sm:$0xff]  }
 0x353   : > { %3092 = vmatpush1.bf16.msra.mxu1 %v4858_v53  ;;  %v4947_v53 = vld [vmem:[#allocation5 + $0x5ec] ss:$16 sps:$4 sm:$0xff]  }
 0x354   : > { %3256 = vmatpush1.bf16.msra.mxu0 %v4861_v54  ;;  %3093 = vmatprep.subr.bf16.mxu1 %v4866_v55  ;;  %v4942_v54 = vld [vmem:[#allocation5 + $0x5e0] ss:$16 sps:$4 sm:$0xff]   ;;  %v4945_v55 = vld [vmem:[#allocation5 + $0x5e8] ss:$16 sps:$4 sm:$0xff]  }
 0x355   : > { %3257 = vmatprep.subr.bf16.mxu0 %v4869_v6  ;;  %v1420_v6 = vrot.slane %v5584_v26, %v749_v4  ;;  %v4954_v4 = vld [vmem:[#allocation5 + $0x620] ss:$16 sps:$4 sm:$0xff]  }
 0x357   : > { %3094 = vmatpush1.bf16.msra.mxu1 %v4864_v56  ;;  %v4950_v56 = vld [vmem:[#allocation5 + $0x604] ss:$16 sps:$4 sm:$0xff]  }
 0x358   : > { %3258 = vmatpush1.bf16.msra.mxu0 %v4867_v57  ;;  %3095 = vmatprep.subr.bf16.mxu1 %v4872_v58  ;;  %v4953_v57 = vld [vmem:[#allocation5 + $0x60c] ss:$16 sps:$4 sm:$0xff]   ;;  %v1432_v58 = vrot.slane %v5584_v26, %v761_v49 }
 0x359   : > { %3259 = vmatprep.subr.bf16.mxu0 %v4875_v59  ;;  %v4948_v59 = vld [vmem:[#allocation5 + $0x600] ss:$16 sps:$4 sm:$0xff]   ;;  %v4965_v49 = vld [vmem:[#allocation5 + $0x64c] ss:$16 sps:$4 sm:$0xff]  }
 0x35b   : > { %3096 = vmatpush1.bf16.msra.mxu1 %v4870_v60  ;;  %v1445_v60 = vpack.c.bf16 %v1420_v6, %v1420_v6  ;;  %v5031_v6 = vld [vmem:[#allocation5 + $0x7ac] ss:$16 sps:$4 sm:$0xff]  }
 0x35c   : > { %3260 = vmatpush1.bf16.msra.mxu0 %v4873_v62  ;;  %3097 = vmatprep.subr.bf16.mxu1 %v4878_v0  ;;  %v4951_v62 = vld [vmem:[#allocation5 + $0x608] ss:$16 sps:$4 sm:$0xff]   ;;  %v4956_v0 = vld [vmem:[#allocation5 + $0x624] ss:$16 sps:$4 sm:$0xff]  }
 0x35d   : > { %3261 = vmatprep.subr.bf16.mxu0 %v4881_v3  ;;  %v1448_v3 = vpack.c.bf16 %v1432_v58, %v1432_v58  ;;  %v5034_v58 = vld [vmem:[#allocation5 + $0x7c4] ss:$16 sps:$4 sm:$0xff]  }
 0x35f   : > { %3098 = vmatpush1.bf16.msra.mxu1 %v4876_v61  ;;  %v4959_v61 = vld [vmem:[#allocation5 + $0x62c] ss:$16 sps:$4 sm:$0xff]  }
 0x360   : > { %3262 = vmatpush1.bf16.msra.mxu0 %v4879_v9  ;;  %3099 = vmatprep.subr.bf16.mxu1 %v4884_v13  ;;  %v4957_v9 = vld [vmem:[#allocation5 + $0x628] ss:$16 sps:$4 sm:$0xff]   ;;  %v4962_v13 = vld [vmem:[#allocation5 + $0x644] ss:$16 sps:$4 sm:$0xff]  }
 0x361   : > { %3263 = vmatprep.subr.bf16.mxu0 %v4887_v14  ;;  %v4960_v14 = vld [vmem:[#allocation5 + $0x640] ss:$16 sps:$4 sm:$0xff]  }
 0x363   : > { %3100 = vmatpush1.bf16.msra.mxu1 %v4882_v15  ;;  %v4963_v15 = vld [vmem:[#allocation5 + $0x648] ss:$16 sps:$4 sm:$0xff]  }
 0x364   : > { %3264 = vmatpush1.bf16.msra.mxu0 %v4885_v16  ;;  %3101 = vmatprep.subr.bf16.mxu1 %v4890_v5  ;;  %v4968_v16 = vld [vmem:[#allocation5 + $0x664] ss:$16 sps:$4 sm:$0xff]   ;;  %v4971_v5 = vld [vmem:[#allocation5 + $0x66c] ss:$16 sps:$4 sm:$0xff]  }
 0x365   : > { %3265 = vmatprep.subr.bf16.mxu0 %v4893_v17  ;;  %v4966_v17 = vld [vmem:[#allocation5 + $0x660] ss:$16 sps:$4 sm:$0xff]  }
 0x367   : > { %3102 = vmatpush1.bf16.msra.mxu1 %v4888_v18  ;;  %v4969_v18 = vld [vmem:[#allocation5 + $0x668] ss:$16 sps:$4 sm:$0xff]  }
 0x368   : > { %3266 = vmatpush1.bf16.msra.mxu0 %v4891_v19  ;;  %3103 = vmatprep.subr.bf16.mxu1 %v4896_v20  ;;  %v4974_v19 = vld [vmem:[#allocation5 + $0x684] ss:$16 sps:$4 sm:$0xff]   ;;  %v4977_v20 = vld [vmem:[#allocation5 + $0x68c] ss:$16 sps:$4 sm:$0xff]  }
 0x369   : > { %3267 = vmatprep.subr.bf16.mxu0 %v4899_v21  ;;  %v4972_v21 = vld [vmem:[#allocation5 + $0x680] ss:$16 sps:$4 sm:$0xff]  }
 0x36b   : > { %3104 = vmatpush1.bf16.msra.mxu1 %v4894_v22  ;;  %v4975_v22 = vld [vmem:[#allocation5 + $0x688] ss:$16 sps:$4 sm:$0xff]  }
 0x36c   : > { %3268 = vmatpush1.bf16.msra.mxu0 %v4897_v23  ;;  %3105 = vmatprep.subr.bf16.mxu1 %v4902_v24  ;;  %v4980_v23 = vld [vmem:[#allocation5 + $0x6a4] ss:$16 sps:$4 sm:$0xff]   ;;  %v4983_v24 = vld [vmem:[#allocation5 + $0x6ac] ss:$16 sps:$4 sm:$0xff]  }
 0x36d   : > { %3269 = vmatprep.subr.bf16.mxu0 %v4905_v10  ;;  %v4978_v10 = vld [vmem:[#allocation5 + $0x6a0] ss:$16 sps:$4 sm:$0xff]  }
 0x36f   : > { %3106 = vmatpush1.bf16.msra.mxu1 %v4900_v11  ;;  %v4981_v11 = vld [vmem:[#allocation5 + $0x6a8] ss:$16 sps:$4 sm:$0xff]  }
 0x370   : > { %3270 = vmatpush1.bf16.msra.mxu0 %v4903_v12  ;;  %3107 = vmatprep.subr.bf16.mxu1 %v4908_v25  ;;  %v4986_v12 = vld [vmem:[#allocation5 + $0x6c4] ss:$16 sps:$4 sm:$0xff]   ;;  %v4989_v25 = vld [vmem:[#allocation5 + $0x6cc] ss:$16 sps:$4 sm:$0xff]  }
 0x371   : > { %3271 = vmatprep.subr.bf16.mxu0 %v4911_v27  ;;  %v4984_v27 = vld [vmem:[#allocation5 + $0x6c0] ss:$16 sps:$4 sm:$0xff]  }
 0x373   : > { %3108 = vmatpush1.bf16.msra.mxu1 %v4906_v28  ;;  %v4987_v28 = vld [vmem:[#allocation5 + $0x6c8] ss:$16 sps:$4 sm:$0xff]  }
 0x374   : > { %3272 = vmatpush1.bf16.msra.mxu0 %v4909_v29  ;;  %3109 = vmatprep.subr.bf16.mxu1 %v4914_v30  ;;  %v4992_v29 = vld [vmem:[#allocation5 + $0x6e4] ss:$16 sps:$4 sm:$0xff]   ;;  %v4995_v30 = vld [vmem:[#allocation5 + $0x6ec] ss:$16 sps:$4 sm:$0xff]  }
 0x375   : > { %3273 = vmatprep.subr.bf16.mxu0 %v4917_v31  ;;  %v4990_v31 = vld [vmem:[#allocation5 + $0x6e0] ss:$16 sps:$4 sm:$0xff]  }
 0x377   : > { %3110 = vmatpush1.bf16.msra.mxu1 %v4912_v32  ;;  %v4993_v32 = vld [vmem:[#allocation5 + $0x6e8] ss:$16 sps:$4 sm:$0xff]  }
 0x378   : > { %3274 = vmatpush1.bf16.msra.mxu0 %v4915_v63  ;;  %3111 = vmatprep.subr.bf16.mxu1 %v4920_v2  ;;  %v4998_v63 = vld [vmem:[#allocation5 + $0x704] ss:$16 sps:$4 sm:$0xff]   ;;  %v5001_v2 = vld [vmem:[#allocation5 + $0x70c] ss:$16 sps:$4 sm:$0xff]  }
 0x379   : > { %3275 = vmatprep.subr.bf16.mxu0 %v4923_v7  ;;  %v4996_v7 = vld [vmem:[#allocation5 + $0x700] ss:$16 sps:$4 sm:$0xff]  }
 0x37b   : > { %3112 = vmatpush1.bf16.msra.mxu1 %v4918_v33  ;;  %v4999_v33 = vld [vmem:[#allocation5 + $0x708] ss:$16 sps:$4 sm:$0xff]  }
 0x37c   : > { %3276 = vmatpush1.bf16.msra.mxu0 %v4921_v34  ;;  %3113 = vmatprep.subr.bf16.mxu1 %v4926_v35  ;;  %v5004_v34 = vld [vmem:[#allocation5 + $0x724] ss:$16 sps:$4 sm:$0xff]   ;;  %v5007_v35 = vld [vmem:[#allocation5 + $0x72c] ss:$16 sps:$4 sm:$0xff]  }
 0x37d   : > { %3277 = vmatprep.subr.bf16.mxu0 %v4929_v36  ;;  %v5002_v36 = vld [vmem:[#allocation5 + $0x720] ss:$16 sps:$4 sm:$0xff]  }
 0x37f   : > { %3114 = vmatpush1.bf16.msra.mxu1 %v4924_v37  ;;  %v5005_v37 = vld [vmem:[#allocation5 + $0x728] ss:$16 sps:$4 sm:$0xff]  }
 0x380   : > { %3278 = vmatpush1.bf16.msra.mxu0 %v4927_v38  ;;  %3115 = vmatprep.subr.bf16.mxu1 %v4932_v43  ;;  %v5010_v38 = vld [vmem:[#allocation5 + $0x744] ss:$16 sps:$4 sm:$0xff]   ;;  %v5013_v43 = vld [vmem:[#allocation5 + $0x74c] ss:$16 sps:$4 sm:$0xff]  }
 0x381   : > { %3279 = vmatprep.subr.bf16.mxu0 %v4935_v44  ;;  %v5008_v44 = vld [vmem:[#allocation5 + $0x740] ss:$16 sps:$4 sm:$0xff]  }
 0x383   : > { %3116 = vmatpush1.bf16.msra.mxu1 %v4930_v45  ;;  %v5011_v45 = vld [vmem:[#allocation5 + $0x748] ss:$16 sps:$4 sm:$0xff]  }
 0x384   : > { %3280 = vmatpush1.bf16.msra.mxu0 %v4933_v46  ;;  %3117 = vmatprep.subr.bf16.mxu1 %v4938_v48  ;;  %v5016_v46 = vld [vmem:[#allocation5 + $0x764] ss:$16 sps:$4 sm:$0xff]   ;;  %v5019_v48 = vld [vmem:[#allocation5 + $0x76c] ss:$16 sps:$4 sm:$0xff]  }
 0x385   : > { %3281 = vmatprep.subr.bf16.mxu0 %v4941_v50  ;;  %v5014_v50 = vld [vmem:[#allocation5 + $0x760] ss:$16 sps:$4 sm:$0xff]  }
 0x387   : > { %3118 = vmatpush1.bf16.msra.mxu1 %v4936_v1  ;;  %v5017_v1 = vld [vmem:[#allocation5 + $0x768] ss:$16 sps:$4 sm:$0xff]  }
 0x388   : > { %3282 = vmatpush1.bf16.msra.mxu0 %v4939_v51  ;;  %3119 = vmatprep.subr.bf16.mxu1 %v4944_v52  ;;  %v5022_v51 = vld [vmem:[#allocation5 + $0x784] ss:$16 sps:$4 sm:$0xff]   ;;  %v5025_v52 = vld [vmem:[#allocation5 + $0x78c] ss:$16 sps:$4 sm:$0xff]  }
 0x389   : > { %3283 = vmatprep.subr.bf16.mxu0 %v4947_v53  ;;  %v5020_v53 = vld [vmem:[#allocation5 + $0x780] ss:$16 sps:$4 sm:$0xff]  }
 0x38b   : > { %3120 = vmatpush1.bf16.msra.mxu1 %v4942_v54  ;;  %v5023_v54 = vld [vmem:[#allocation5 + $0x788] ss:$16 sps:$4 sm:$0xff]  }
 0x38c   : > { %3284 = vmatpush1.bf16.msra.mxu0 %v4945_v55  ;;  %3130 = vmatprep.subr.bf16.mxu1 %v4950_v56  ;;  %v5028_v55 = vld [vmem:[#allocation5 + $0x7a4] ss:$16 sps:$4 sm:$0xff]   ;;  %v5026_v56 = vld [vmem:[#allocation5 + $0x7a0] ss:$16 sps:$4 sm:$0xff]  }
 0x38d   : > { %3294 = vmatprep.subr.bf16.mxu0 %v4953_v57  ;;  %v5029_v57 = vld [vmem:[#allocation5 + $0x7a8] ss:$16 sps:$4 sm:$0xff]  }
 0x38e   : > { %3122 = vmatmul.mubr.bf16.vlgmr.msra.gmra.mrb[4].mxu1 %v1445_v60 }
 0x38f   : > { %3286 = vmatmul.mubr.bf16.vlgmr.msra.gmra.mrb[16].mxu0 %v1445_v60  ;;  %3131 = vmatpush1.bf16.msra.mxu1 %v4948_v59  ;;  %v5037_v59 = vld [vmem:[#allocation5 + $0x7cc] ss:$16 sps:$4 sm:$0xff]   ;;  %v5032_v60 = vld [vmem:[#allocation5 + $0x7c0] ss:$16 sps:$4 sm:$0xff]  }
 0x390   : > { %3162 = vmatprep.mubr.bf16.mxu1 %v1448_v3  ;;  %3295 = vmatpush1.bf16.msra.mxu0 %v4951_v62  ;;  %v5035_v62 = vld [vmem:[#allocation5 + $0x7c8] ss:$16 sps:$4 sm:$0xff]  }
 0x391   : > { %3326 = vmatprep.mubr.bf16.mxu0 %v1448_v3  ;;  %3132 = vmatprep.subr.bf16.mxu1 %v4956_v0  ;;  %v5040_v0 = vld [vmem:[#allocation5 + $0x7e4] ss:$16 sps:$4 sm:$0xff]   ;;  %v5043_v3 = vld [vmem:[#allocation5 + $0x7ec] ss:$16 sps:$4 sm:$0xff]  }
 0x392   : > { %3296 = vmatprep.subr.bf16.mxu0 %v4959_v61  ;;  %v5038_v61 = vld [vmem:[#allocation5 + $0x7e0] ss:$16 sps:$4 sm:$0xff]  }
 0x393   : > { %3133 = vmatpush1.bf16.msra.mxu1 %v4954_v4  ;;  %v5041_v4 = vld [vmem:[#allocation5 + $0x7e8] ss:$16 sps:$4 sm:$0xff]  }
 0x394   : > { %3297 = vmatpush1.bf16.msra.mxu0 %v4957_v9  ;;  %3134 = vmatprep.subr.bf16.mxu1 %v4962_v13  ;;  %v1428_v9 = vrot.slane %v5584_v26, %v757_v47  ;;  %v5046_v13 = vld [vmem:[#allocation7 + $0x4] ss:$8 sps:$4 sm:$0xff]   ;;  %v5053_v47 = vld [vmem:[#allocation7 + $0x30] ss:$8 sps:$4 sm:$0xff]  }
 0x395   : > { %3298 = vmatprep.subr.bf16.mxu0 %v4965_v49  ;;  %v5044_v49 = vld [vmem:[#allocation7] ss:$8 sps:$4 sm:$0xff]   ;;  %v5058_v26 = vld [vmem:[#allocation7 + $0x44] ss:$8 sps:$4 sm:$0xff]  }
 0x397   : > { %3135 = vmatpush1.bf16.msra.mxu1 %v4960_v14  ;;  %v1447_v14 = vpack.c.bf16 %v1428_v9, %v1428_v9 }
 0x398   : > { %3299 = vmatpush1.bf16.msra.mxu0 %v4963_v15  ;;  %3136 = vmatprep.subr.bf16.mxu1 %v4968_v16  ;;  %v5049_v15 = vld [vmem:[#allocation7 + $0x14] ss:$8 sps:$4 sm:$0xff]   ;;  %v5047_v16 = vld [vmem:[#allocation7 + $0x10] ss:$8 sps:$4 sm:$0xff]  }
 0x399   : > { %3300 = vmatprep.subr.bf16.mxu0 %v4971_v5  ;;  %v5052_v5 = vld [vmem:[#allocation7 + $0x24] ss:$8 sps:$4 sm:$0xff]  }
 0x39b   : > { %3137 = vmatpush1.bf16.msra.mxu1 %v4966_v17  ;;  %v5050_v17 = vld [vmem:[#allocation7 + $0x20] ss:$8 sps:$4 sm:$0xff]  }
 0x39c   : > { %3301 = vmatpush1.bf16.msra.mxu0 %v4969_v18  ;;  %3138 = vmatprep.subr.bf16.mxu1 %v4974_v19  ;;  %v5056_v18 = vld [vmem:[#allocation7 + $0x40] ss:$8 sps:$4 sm:$0xff]   ;;  %v5061_v19 = vld [vmem:[#allocation7 + $0x54] ss:$8 sps:$4 sm:$0xff]  }
 0x39d   : > { %3302 = vmatprep.subr.bf16.mxu0 %v4977_v20  ;;  %v5059_v20 = vld [vmem:[#allocation7 + $0x50] ss:$8 sps:$4 sm:$0xff]  }
 0x39f   : > { %3139 = vmatpush1.bf16.msra.mxu1 %v4972_v21  ;;  %v5064_v21 = vld [vmem:[#allocation7 + $0x64] ss:$8 sps:$4 sm:$0xff]  }
 0x3a0   : > { %3303 = vmatpush1.bf16.msra.mxu0 %v4975_v22  ;;  %3140 = vmatprep.subr.bf16.mxu1 %v4980_v23  ;;  %v5062_v22 = vld [vmem:[#allocation7 + $0x60] ss:$8 sps:$4 sm:$0xff]   ;;  %v5067_v23 = vld [vmem:[#allocation7 + $0x74] ss:$8 sps:$4 sm:$0xff]  }
 0x3a1   : > { %3304 = vmatprep.subr.bf16.mxu0 %v4983_v24  ;;  %v5065_v24 = vld [vmem:[#allocation7 + $0x70] ss:$8 sps:$4 sm:$0xff]  }
 0x3a3   : > { %3141 = vmatpush1.bf16.msra.mxu1 %v4978_v10  ;;  %v5070_v10 = vld [vmem:[#allocation7 + $0x84] ss:$8 sps:$4 sm:$0xff]  }
 0x3a4   : > { %3305 = vmatpush1.bf16.msra.mxu0 %v4981_v11  ;;  %3142 = vmatprep.subr.bf16.mxu1 %v4986_v12  ;;  %v5068_v11 = vld [vmem:[#allocation7 + $0x80] ss:$8 sps:$4 sm:$0xff]   ;;  %v5073_v12 = vld [vmem:[#allocation7 + $0x94] ss:$8 sps:$4 sm:$0xff]  }
 0x3a5   : > { %3306 = vmatprep.subr.bf16.mxu0 %v4989_v25  ;;  %v5071_v25 = vld [vmem:[#allocation7 + $0x90] ss:$8 sps:$4 sm:$0xff]  }
 0x3a7   : > { %3143 = vmatpush1.bf16.msra.mxu1 %v4984_v27  ;;  %v5076_v27 = vld [vmem:[#allocation7 + $0xa4] ss:$8 sps:$4 sm:$0xff]  }
 0x3a8   : > { %3307 = vmatpush1.bf16.msra.mxu0 %v4987_v28  ;;  %3144 = vmatprep.subr.bf16.mxu1 %v4992_v29  ;;  %v5074_v28 = vld [vmem:[#allocation7 + $0xa0] ss:$8 sps:$4 sm:$0xff]   ;;  %v5079_v29 = vld [vmem:[#allocation7 + $0xb4] ss:$8 sps:$4 sm:$0xff]  }
 0x3a9   : > { %3308 = vmatprep.subr.bf16.mxu0 %v4995_v30  ;;  %v5077_v30 = vld [vmem:[#allocation7 + $0xb0] ss:$8 sps:$4 sm:$0xff]  }
 0x3ab   : > { %3145 = vmatpush1.bf16.msra.mxu1 %v4990_v31  ;;  %v5082_v31 = vld [vmem:[#allocation7 + $0xc4] ss:$8 sps:$4 sm:$0xff]  }
 0x3ac   : > { %3309 = vmatpush1.bf16.msra.mxu0 %v4993_v32  ;;  %3146 = vmatprep.subr.bf16.mxu1 %v4998_v63  ;;  %v5080_v32 = vld [vmem:[#allocation7 + $0xc0] ss:$8 sps:$4 sm:$0xff]   ;;  %v5085_v63 = vld [vmem:[#allocation7 + $0xd4] ss:$8 sps:$4 sm:$0xff]  }
 0x3ad   : > { %3310 = vmatprep.subr.bf16.mxu0 %v5001_v2  ;;  %v5083_v2 = vld [vmem:[#allocation7 + $0xd0] ss:$8 sps:$4 sm:$0xff]  }
 0x3af   : > { %3147 = vmatpush1.bf16.msra.mxu1 %v4996_v7  ;;  %v5088_v7 = vld [vmem:[#allocation7 + $0xe4] ss:$8 sps:$4 sm:$0xff]  }
 0x3b0   : > { %3311 = vmatpush1.bf16.msra.mxu0 %v4999_v33  ;;  %3148 = vmatprep.subr.bf16.mxu1 %v5004_v34  ;;  %v5086_v33 = vld [vmem:[#allocation7 + $0xe0] ss:$8 sps:$4 sm:$0xff]   ;;  %v5091_v34 = vld [vmem:[#allocation7 + $0xf4] ss:$8 sps:$4 sm:$0xff]  }
 0x3b1   : > { %3312 = vmatprep.subr.bf16.mxu0 %v5007_v35  ;;  %v5089_v35 = vld [vmem:[#allocation7 + $0xf0] ss:$8 sps:$4 sm:$0xff]  }
 0x3b3   : > { %3149 = vmatpush1.bf16.msra.mxu1 %v5002_v36  ;;  %v5094_v36 = vld [vmem:[#allocation7 + $0x104] ss:$8 sps:$4 sm:$0xff]  }
 0x3b4   : > { %3313 = vmatpush1.bf16.msra.mxu0 %v5005_v37  ;;  %3150 = vmatprep.subr.bf16.mxu1 %v5010_v38  ;;  %v5140_v37 = vld [vmem:[%s5702_s11 + $0x40] sm:$0xff]  }
 0x3b5   : > { %3314 = vmatprep.subr.bf16.mxu0 %v5013_v43  ;;  %v5141_v38 = vld [vmem:[%s5702_s11] sm:$0xff]   ;;  %v5142_v43 = vld [vmem:[%s5702_s11 + $0x48] sm:$0xff]  }
 0x3b7   : > { %3151 = vmatpush1.bf16.msra.mxu1 %v5008_v44  ;;  %v5143_v44 = vld [vmem:[%s5702_s11 + $0x8] sm:$0xff]  }
 0x3b8   : > { %3315 = vmatpush1.bf16.msra.mxu0 %v5011_v45  ;;  %3152 = vmatprep.subr.bf16.mxu1 %v5016_v46  ;;  %v5144_v45 = vld [vmem:[%s5702_s11 + $0x50] sm:$0xff]  }
 0x3b9   : > { %3316 = vmatprep.subr.bf16.mxu0 %v5019_v48  ;;  %v5145_v46 = vld [vmem:[%s5702_s11 + $0x10] sm:$0xff]   ;;  %v5146_v48 = vld [vmem:[%s5702_s11 + $0x58] sm:$0xff]  }
 0x3bb   : > { %3153 = vmatpush1.bf16.msra.mxu1 %v5014_v50  ;;  %v5147_v50 = vld [vmem:[%s5702_s11 + $0x18] sm:$0xff]  }
 0x3bc   : > { %3317 = vmatpush1.bf16.msra.mxu0 %v5017_v1  ;;  %3154 = vmatprep.subr.bf16.mxu1 %v5022_v51  ;;  %v5148_v1 = vld [vmem:[%s5702_s11 + $0x60] sm:$0xff]  }
 0x3bd   : > { %3318 = vmatprep.subr.bf16.mxu0 %v5025_v52  ;;  %v5149_v51 = vld [vmem:[%s5702_s11 + $0x20] sm:$0xff]   ;;  %v5150_v52 = vld [vmem:[%s5702_s11 + $0x68] sm:$0xff]  }
 0x3bf   : > { %3155 = vmatpush1.bf16.msra.mxu1 %v5020_v53  ;;  %v5151_v53 = vld [vmem:[%s5702_s11 + $0x28] sm:$0xff]  }
 0x3c0   : > { %3319 = vmatpush1.bf16.msra.mxu0 %v5023_v54  ;;  %3156 = vmatprep.subr.bf16.mxu1 %v5028_v55  ;;  %v5645_v54 = vld [vmem:[%s5699_s8] sm:$0xf] }
 0x3c1   : > { %3320 = vmatprep.subr.bf16.mxu0 %v5031_v6  ;;  %v2990_v55 = vrot.slane %v5645_v54, %v5513_v41  ;;  %v2994_v6 = vrot.slane %v5645_v54, %v5510_v40 }
 0x3c3   : > { %3157 = vmatpush1.bf16.msra.mxu1 %v5026_v56  ;;  %v3002_v56 = vrot.slane %v5645_v54, %v5566_v8 }
 0x3c4   : > { %3321 = vmatpush1.bf16.msra.mxu0 %v5029_v57  ;;  %3158 = vmatprep.subr.bf16.mxu1 %v5034_v58 }
 0x3c5   : > { %3322 = vmatprep.subr.bf16.mxu0 %v5037_v59 }
 0x3c7   : > { %3159 = vmatpush1.bf16.msra.mxu1 %v5032_v60 }
 0x3c8   : > { %3323 = vmatpush1.bf16.msra.mxu0 %v5035_v62  ;;  %3160 = vmatprep.subr.bf16.mxu1 %v5040_v0 }
 0x3c9   : > { %3324 = vmatprep.subr.bf16.mxu0 %v5043_v3 }
 0x3cb   : > { %3161 = vmatpush1.bf16.msra.mxu1 %v5038_v61 }
 0x3cc   : > { %3325 = vmatpush1.bf16.msra.mxu0 %v5041_v4  ;;  %3739 = vmatprep.subr.bf16.mxu1 %v5046_v13 }
 0x3cd   : > { %4517 = vmatprep.subr.bf16.mxu0 %v5140_v37  ;;  %v5136_v37 = vld [vmem:[#allocation7 + $0x1e4] ss:$8 sps:$4 sm:$0xff]  }
 0x3ce   : > { %3163 = vmatmul.mubr.bf16.vlgmr.msra.gmra.mrb[4].mxu1 %v1447_v14 }
 0x3cf   : > { %3327 = vmatmul.mubr.bf16.vlgmr.msra.gmra.mrb[16].mxu0 %v1447_v14  ;;  %3740 = vmatpush1.bf16.msra.mxu1 %v5044_v49 }
 0x3d0   : > { %3741 = vmatprep.subr.bf16.mxu1 %v5049_v15  ;;  %4518 = vmatpush3.bf16.msra.mxu0 %v5141_v38  ;;  %v5134_v38 = vld [vmem:[#allocation7 + $0x1e0] ss:$8 sps:$4 sm:$0xff]  }
 0x3d1   : > { %4519 = vmatprep.subr.bf16.mxu0 %v5142_v43 }
 0x3d3   : > { %3742 = vmatpush1.bf16.msra.mxu1 %v5047_v16 }
 0x3d4   : > { %3743 = vmatprep.subr.bf16.mxu1 %v5052_v5  ;;  %4520 = vmatpush3.bf16.msra.mxu0 %v5143_v44  ;;  %v5092_v5 = vld [vmem:[#allocation7 + $0x100] ss:$8 sps:$4 sm:$0xff]   ;;  %v5139_v44 = vld [vmem:[#allocation7 + $0x1f4] ss:$8 sps:$4 sm:$0xff]  }
 0x3d5   : > { %4521 = vmatprep.subr.bf16.mxu0 %v5144_v45  ;;  %v5137_v45 = vld [vmem:[#allocation7 + $0x1f0] ss:$8 sps:$4 sm:$0xff]  }
 0x3d7   : > { %3744 = vmatpush1.bf16.msra.mxu1 %v5050_v17 }
 0x3d8   : > { %3745 = vmatprep.subr.bf16.mxu1 %v5055_v39  ;;  %4522 = vmatpush3.bf16.msra.mxu0 %v5145_v46  ;;  %v5097_v39 = vld [vmem:[#allocation7 + $0x114] ss:$8 sps:$4 sm:$0xff]  }
 0x3d9   : > { %4523 = vmatprep.subr.bf16.mxu0 %v5146_v48 }
 0x3db   : > { %3746 = vmatpush1.bf16.msra.mxu1 %v5053_v47  ;;  %v5095_v47 = vld [vmem:[#allocation7 + $0x110] ss:$8 sps:$4 sm:$0xff]  }
 0x3dc   : > { %3747 = vmatprep.subr.bf16.mxu1 %v5058_v26  ;;  %4524 = vmatpush3.bf16.msra.mxu0 %v5147_v50  ;;  %v5100_v26 = vld [vmem:[#allocation7 + $0x124] ss:$8 sps:$4 sm:$0xff]   ;;  %v5152_v50 = vld [vmem:[%s5702_s11 + $0x70] sm:$0xff]  }
 0x3dd   : > { %4525 = vmatprep.subr.bf16.mxu0 %v5148_v1  ;;  %v5154_v1 = vld [vmem:[%s5702_s11 + $0x78] sm:$0xff]  }
 0x3df   : > { %3748 = vmatpush1.bf16.msra.mxu1 %v5056_v18  ;;  %v5098_v18 = vld [vmem:[#allocation7 + $0x120] ss:$8 sps:$4 sm:$0xff]  }
 0x3e0   : > { %3749 = vmatprep.subr.bf16.mxu1 %v5061_v19  ;;  %4526 = vmatpush3.bf16.msra.mxu0 %v5149_v51  ;;  %v5103_v19 = vld [vmem:[#allocation7 + $0x134] ss:$8 sps:$4 sm:$0xff]  }
 0x3e1   : > { %4527 = vmatprep.subr.bf16.mxu0 %v5150_v52  ;;  %v5155_v51 = vld [vmem:[%s5702_s11 + $0x38] sm:$0xff]   ;;  %v3407_v52 = vld [vmem:[%s5722_s30] sm:$0x3] }
 0x3e3   : > { %3750 = vmatpush1.bf16.msra.mxu1 %v5059_v20  ;;  %v5101_v20 = vld [vmem:[#allocation7 + $0x130] ss:$8 sps:$4 sm:$0xff]  }
 0x3e4   : > { %3751 = vmatprep.subr.bf16.mxu1 %v5064_v21  ;;  %4528 = vmatpush3.bf16.msra.mxu0 %v5151_v53  ;;  %v5106_v21 = vld [vmem:[#allocation7 + $0x144] ss:$8 sps:$4 sm:$0xff]   ;;  %v3732_v53 = vrot.slane %v3407_v52, %v5513_v41  ;;  %v3857_v41 = vld [vmem:[%s5723_s26] sm:$0x1] }
 0x3e5   : > { %4529 = vmatprep.subr.bf16.mxu0 %v5152_v50 }
 0x3e7   : > { %3752 = vmatpush1.bf16.msra.mxu1 %v5062_v22  ;;  %v5104_v22 = vld [vmem:[#allocation7 + $0x140] ss:$8 sps:$4 sm:$0xff]  }
 0x3e8   : > { %3753 = vmatprep.subr.bf16.mxu1 %v5067_v23  ;;  %v5109_v23 = vld [vmem:[#allocation7 + $0x154] ss:$8 sps:$4 sm:$0xff]  }
 0x3eb   : > { %3754 = vmatpush1.bf16.msra.mxu1 %v5065_v24  ;;  %v5107_v24 = vld [vmem:[#allocation7 + $0x150] ss:$8 sps:$4 sm:$0xff]  }
 0x3ec   : > { %3755 = vmatprep.subr.bf16.mxu1 %v5070_v10  ;;  %v5112_v10 = vld [vmem:[#allocation7 + $0x164] ss:$8 sps:$4 sm:$0xff]  }
 0x3ef   : > { %3756 = vmatpush1.bf16.msra.mxu1 %v5068_v11  ;;  %v5110_v11 = vld [vmem:[#allocation7 + $0x160] ss:$8 sps:$4 sm:$0xff]  }
 0x3f0   : > { %3757 = vmatprep.subr.bf16.mxu1 %v5073_v12  ;;  %v5115_v12 = vld [vmem:[#allocation7 + $0x174] ss:$8 sps:$4 sm:$0xff]  }
 0x3f3   : > { %3758 = vmatpush1.bf16.msra.mxu1 %v5071_v25  ;;  %v5113_v25 = vld [vmem:[#allocation7 + $0x170] ss:$8 sps:$4 sm:$0xff]  }
 0x3f4   : > { %3759 = vmatprep.subr.bf16.mxu1 %v5076_v27  ;;  %v5118_v27 = vld [vmem:[#allocation7 + $0x184] ss:$8 sps:$4 sm:$0xff]  }
 0x3f7   : > { %3760 = vmatpush1.bf16.msra.mxu1 %v5074_v28  ;;  %v5116_v28 = vld [vmem:[#allocation7 + $0x180] ss:$8 sps:$4 sm:$0xff]  }
 0x3f8   : > { %3761 = vmatprep.subr.bf16.mxu1 %v5079_v29  ;;  %v5121_v29 = vld [vmem:[#allocation7 + $0x194] ss:$8 sps:$4 sm:$0xff]  }
 0x3fb   : > { %3762 = vmatpush1.bf16.msra.mxu1 %v5077_v30  ;;  %v5119_v30 = vld [vmem:[#allocation7 + $0x190] ss:$8 sps:$4 sm:$0xff]  }
 0x3fc   : > { %3763 = vmatprep.subr.bf16.mxu1 %v5082_v31  ;;  %v5124_v31 = vld [vmem:[#allocation7 + $0x1a4] ss:$8 sps:$4 sm:$0xff]  }
 0x3ff   : > { %3764 = vmatpush1.bf16.msra.mxu1 %v5080_v32  ;;  %v5122_v32 = vld [vmem:[#allocation7 + $0x1a0] ss:$8 sps:$4 sm:$0xff]  }
 0x400   : > { %3765 = vmatprep.subr.bf16.mxu1 %v5085_v63  ;;  %v5127_v63 = vld [vmem:[#allocation7 + $0x1b4] ss:$8 sps:$4 sm:$0xff]  }
 0x403   : > { %3766 = vmatpush1.bf16.msra.mxu1 %v5083_v2  ;;  %v5125_v2 = vld [vmem:[#allocation7 + $0x1b0] ss:$8 sps:$4 sm:$0xff]  }
 0x404   : > { %3767 = vmatprep.subr.bf16.mxu1 %v5088_v7  ;;  %v5130_v7 = vld [vmem:[#allocation7 + $0x1c4] ss:$8 sps:$4 sm:$0xff]  }
 0x407   : > { %3768 = vmatpush1.bf16.msra.mxu1 %v5086_v33  ;;  %v5128_v33 = vld [vmem:[#allocation7 + $0x1c0] ss:$8 sps:$4 sm:$0xff]  }
 0x408   : > { %3769 = vmatprep.subr.bf16.mxu1 %v5091_v34  ;;  %v5133_v34 = vld [vmem:[#allocation7 + $0x1d4] ss:$8 sps:$4 sm:$0xff]  }
 0x40b   : > { %3770 = vmatpush1.bf16.msra.mxu1 %v5089_v35  ;;  %v5131_v35 = vld [vmem:[#allocation7 + $0x1d0] ss:$8 sps:$4 sm:$0xff]  }
 0x40c   : > { %3780 = vmatprep.subr.bf16.mxu1 %v5094_v36  ;;  %v2998_v36 = vrot.slane %v5645_v54, %v5516_v42  ;;  %v5153_v42 = vld [vmem:[%s5702_s11 + $0x30] sm:$0xff]   ;;  %v3736_v54 = vrot.slane %v3407_v52, %v5510_v40 }
 0x40d   : > { %4530 = vmatpush3.bf16.msra.mxu0 %v5153_v42 }
 0x40e   : > { %4531 = vmatprep.subr.bf16.mxu0 %v5154_v1 }
 0x411   : > { %4532 = vmatpush3.bf16.msra.mxu0 %v5155_v51 }
 0x4a1   : > { %v3164_v57 = vpop.f32.mrb[4].mxu1 }
 0x4a2   : > { %v4551_v58 = vadd.f32 %v3164_v57, %v2990_v55  ;;  %v5653_v59 = vpop.f32.mrb[16].mxu0  ;;  %v3166_v60 = vpop.f32.mrb[5].mxu1 }
 0x4a3   : > { %v4552_v62 = vadd.f32 %v3166_v60, %v2994_v6  ;;  %v3330_v0 = vpop.f32.mrb[17].mxu0  ;;  %v3168_v3 = vpop.f32.mrb[6].mxu1  ;;  %v4553_v43 = vadd.f32 %v5653_v59, %v2998_v36 }
 0x4a4   : > { %v3335_v61 = vmax.f32 %v4551_v58, 0.0  ;;  %v4554_v4 = vadd.f32 %v3330_v0, %v3002_v56  ;;  %v3332_v9 = vpop.f32.mrb[18].mxu0  ;;  %v3169_v13 = vpop.f32.mrb[7].mxu1 }
 0x4a5   : > { %v3336_v49 = vmax.f32 %v4552_v62, 0.0  ;;  %v3333_v14 = vpop.f32.mrb[19].mxu0  ;;  %v3337_v46 = vmax.f32 %v4553_v43, 0.0 }
 0x4a6   : > { %v3338_v15 = vmax.f32 %v4554_v4, 0.0  ;;  %v3339_v17 = vpack.c.bf16 %v3335_v61, %v3335_v61 }
 0x4a7   : > { %v3340_v16 = vpack.c.bf16 %v3336_v49, %v3336_v49  ;;  %v3341_v48 = vpack.c.bf16 %v3337_v46, %v3337_v46 }
 0x4a8   : > { %v3342_v8 = vpack.c.bf16 %v3338_v15, %v3338_v15 }
 0x4a9   : > { %3771 = vmatprep.mubr.bf16.mxu1 %v3340_v16 }
 0x4aa   : > { %3772 = vmatmul.mubr.bf16.vlgmr.msra.gmra.mrb[8].mxu1 %v3339_v17 }
 0x4ab   : > { %3781 = vmatpush1.bf16.msra.mxu1 %v5092_v5  ;;  %3812 = vmatprep.mubr.bf16.mxu1 %v3342_v8 }
 0x4ac   : > { %3782 = vmatprep.subr.bf16.mxu1 %v5097_v39 }
 0x4af   : > { %3783 = vmatpush1.bf16.msra.mxu1 %v5095_v47 }
 0x4b0   : > { %3784 = vmatprep.subr.bf16.mxu1 %v5100_v26 }
 0x4b3   : > { %3785 = vmatpush1.bf16.msra.mxu1 %v5098_v18 }
 0x4b4   : > { %3786 = vmatprep.subr.bf16.mxu1 %v5103_v19 }
 0x4b7   : > { %3787 = vmatpush1.bf16.msra.mxu1 %v5101_v20 }
 0x4b8   : > { %3788 = vmatprep.subr.bf16.mxu1 %v5106_v21 }
 0x4bb   : > { %3789 = vmatpush1.bf16.msra.mxu1 %v5104_v22 }
 0x4bc   : > { %3790 = vmatprep.subr.bf16.mxu1 %v5109_v23 }
 0x4bf   : > { %3791 = vmatpush1.bf16.msra.mxu1 %v5107_v24 }
 0x4c0   : > { %3792 = vmatprep.subr.bf16.mxu1 %v5112_v10 }
 0x4c3   : > { %3793 = vmatpush1.bf16.msra.mxu1 %v5110_v11 }
 0x4c4   : > { %3794 = vmatprep.subr.bf16.mxu1 %v5115_v12 }
 0x4c7   : > { %3795 = vmatpush1.bf16.msra.mxu1 %v5113_v25 }
 0x4c8   : > { %3796 = vmatprep.subr.bf16.mxu1 %v5118_v27 }
 0x4cb   : > { %3797 = vmatpush1.bf16.msra.mxu1 %v5116_v28 }
 0x4cc   : > { %3798 = vmatprep.subr.bf16.mxu1 %v5121_v29 }
 0x4cf   : > { %3799 = vmatpush1.bf16.msra.mxu1 %v5119_v30 }
 0x4d0   : > { %3800 = vmatprep.subr.bf16.mxu1 %v5124_v31 }
 0x4d3   : > { %3801 = vmatpush1.bf16.msra.mxu1 %v5122_v32 }
 0x4d4   : > { %3802 = vmatprep.subr.bf16.mxu1 %v5127_v63 }
 0x4d7   : > { %3803 = vmatpush1.bf16.msra.mxu1 %v5125_v2 }
 0x4d8   : > { %3804 = vmatprep.subr.bf16.mxu1 %v5130_v7 }
 0x4db   : > { %3805 = vmatpush1.bf16.msra.mxu1 %v5128_v33 }
 0x4dc   : > { %3806 = vmatprep.subr.bf16.mxu1 %v5133_v34 }
 0x4df   : > { %3807 = vmatpush1.bf16.msra.mxu1 %v5131_v35 }
 0x4e0   : > { %3808 = vmatprep.subr.bf16.mxu1 %v5136_v37 }
 0x4e3   : > { %3809 = vmatpush1.bf16.msra.mxu1 %v5134_v38 }
 0x4e4   : > { %3810 = vmatprep.subr.bf16.mxu1 %v5139_v44 }
 0x4e7   : > { %3811 = vmatpush1.bf16.msra.mxu1 %v5137_v45 }
 0x4ea   : > { %3813 = vmatmul.mubr.bf16.vlgmr.msra.gmra.mrb[8].mxu1 %v3341_v48 }
 0x5bd   : > { %v3814_v55 = vpop.f32.mrb[8].mxu1 }
 0x5be   : > { %v4555_v6 = vadd.f32 %v3814_v55, %v3732_v53  ;;  %v3816_v56 = vpop.f32.mrb[9].mxu1 }
 0x5bf   : > { %v4556_v57 = vadd.f32 %v3816_v56, %v3736_v54  ;;  %v3818_v58 = vpop.f32.mrb[10].mxu1 }
 0x5c0   : > { %v3821_v59 = vmax.f32 %v4555_v6, 0.0  ;;  %v3819_v60 = vpop.f32.mrb[11].mxu1 }
 0x5c1   : > { %v3822_v62 = vmax.f32 %v4556_v57, 0.0 }
 0x5c2   : > { %v3823_v3 = vpack.c.bf16 %v3821_v59, %v3821_v59 }
 0x5c3   : > { %v3824_v0 = vpack.c.bf16 %v3822_v62, %v3822_v62 }
 0x5c5   : > { %3986 = vmatprep.mubr.bf16.mxu0 %v3824_v0 }
 0x5c6   : > { %3987 = vmatmul.mubr.bf16.vlgmr.msra.gmra.mrb[20].mxu0 %v3823_v3 }
 0x699   : > { %v4533_v61 = vpop.f32.mrb[20].mxu0 }
 0x69a   : > { %v4534_v4 = vpop.f32.mrb[21].mxu0 }
 0x69b   : > { %v4535_v40 = vadd.f32 %v4534_v4, %v4533_v61  ;;  %v4536_v9 = vpop.f32.mrb[22].mxu0 }
 0x69c   : > { %v4537_v13 = vpop.f32.mrb[23].mxu0 }
 0x69d   : > { %v3989_v49 = vadd.f32 %v4535_v40, %v3857_v41 }
 0x69f   : > { %3995 = vst.msk [vmem:[%s508_s24] sm:$0x1] %vm3994_vm2, %v3989_v49 }
 0x6a0 PF: > { %s5725_s28 = sld [smem:[#allocation11_spill]]  ;;  %s5726_s25 = sld [smem:[#allocation10_spill]] }
 0x6a1   : > { %s5727_s26 = smov %s5729_s17 }
 0x6a6   : > { %s25_s27 = sadd.s32 1, %s5725_s28  }
 0x6a7   : > { %p22_p5 = scmp.ge.s32.totalorder %s25_s27, 4  }
 0x6a9   :  { %24 = sbr.rel (!%p22_p5) target bundleno = 7 (0x7), region = 123 }
 0x6b0   :  { %4013 = vsyncpa [#allocation4], 1 }
 0x6b1   :  { %4015 = vsyncpa [#allocation4 + $0x1], 1 }
 0x6b2   :  { %4016 = vsyncpa [#allocation6], 1 }

</bundles_post_ra>
